<compile_context>
chip_gen: v7x
topology: tpu7x:2x2x1
jax: 0.10.0
libtpu: 0.0.40
codegen_flags: <defaults>
</compile_context>

<pallas_src>
import functools

import jax
import jax.numpy as jnp
from jax.experimental import pallas as pl
from jax.experimental.pallas import tpu as pltpu

INPUT_SIZE = 784          # 28 * 28
HIDDEN = 400
REDUCED = HIDDEN // 10    # 40
SE_PAD = 128              # squeeze dim padded to a full 128-lane tile


def _round_up(x, m):
    return (x + m - 1) // m * m


def _shared_subnetwork_kernel(x_ref, w1_ref, b1_ref, se1a_ref, se1b_ref,
                              w2_ref, b2_ref, se2a_ref, se2b_ref, o_ref):
    # Hoist the VMEM-resident weight/bias loads; reused by both sub-tiles.
    w1 = w1_ref[...]
    b1 = b1_ref[...]
    se1a = se1a_ref[...]
    se1b = se1b_ref[...]
    w2 = w2_ref[...]
    b2 = b2_ref[...]
    se2a = se2a_ref[...]
    se2b = se2b_ref[...]

    def chain(x):
        # x: (sub_b, 784) bf16. bf16 MXU inputs, f32 accumulation,
        # f32 bias/relu/sigmoid; single bf16 cast of h1/h2 reused everywhere.
        h1 = jnp.dot(x, w1, preferred_element_type=jnp.float32) + b1
        h1 = jnp.maximum(h1, 0.0)
        h1_bf = h1.astype(jnp.bfloat16)

        s1 = jnp.maximum(
            jnp.dot(h1_bf, se1a, preferred_element_type=jnp.float32), 0.0)
        g1 = jax.nn.sigmoid(
            jnp.dot(s1.astype(jnp.bfloat16), se1b,
                    preferred_element_type=jnp.float32))
        h1g = h1_bf * g1.astype(jnp.bfloat16)        # bf16 gate -> feeds W2

        h2 = jnp.dot(h1g, w2, preferred_element_type=jnp.float32) + b2
        h2 = jnp.maximum(h2, 0.0)
        h2_bf = h2.astype(jnp.bfloat16)

        s2 = jnp.maximum(
            jnp.dot(h2_bf, se2a, preferred_element_type=jnp.float32), 0.0)
        g2 = jax.nn.sigmoid(
            jnp.dot(s2.astype(jnp.bfloat16), se2b,
                    preferred_element_type=jnp.float32))
        return h2_bf * g2.astype(jnp.bfloat16)       # bf16 output

    tb = x_ref.shape[0]
    if tb % 32 == 0:
        # Two independent batch sub-tiles: the scheduler can overlap one
        # sub-tile's MXU work with the other's EUP sigmoid / VALU gating.
        half = tb // 2
        ya = chain(x_ref[0:half, :])
        yb = chain(x_ref[half:tb, :])
        o_ref[0:half, :] = ya
        o_ref[half:tb, :] = yb
    else:
        o_ref[...] = chain(x_ref[...])


def prepare_params(params):
    """One-time prep: transpose to (in, out), cast to bf16, zero-pad SE dims."""
    (w1, b1, se1a, se1b, w2, b2, se2a, se2b) = params

    def pad_squeeze(w):   # (REDUCED, HIDDEN) -> (HIDDEN, SE_PAD) bf16
        wt = w.T.astype(jnp.bfloat16)
        return jnp.pad(wt, ((0, 0), (0, SE_PAD - REDUCED)))

    def pad_expand(w):    # (HIDDEN, REDUCED) -> (SE_PAD, HIDDEN) bf16
        wt = w.T.astype(jnp.bfloat16)
        return jnp.pad(wt, ((0, SE_PAD - REDUCED), (0, 0)))

    return (
        w1.T.astype(jnp.bfloat16),                 # (784, 400)
        b1.reshape(1, HIDDEN).astype(jnp.float32),
        pad_squeeze(se1a),                         # (400, 128)
        pad_expand(se1b),                          # (128, 400)
        w2.T.astype(jnp.bfloat16),                 # (400, 400)
        b2.reshape(1, HIDDEN).astype(jnp.float32),
        pad_squeeze(se2a),                         # (400, 128)
        pad_expand(se2b),                          # (128, 400)
    )


@functools.partial(jax.jit, static_argnames=("tile_b",))
def shared_subnetwork_forward(x, prepared, tile_b=512):
    """x: leading batch dim, trailing dims flatten to 784. Returns (B, 400) bf16."""
    (w1_t, b1_2d, se1a_p, se1b_p, w2_t, b2_2d, se2a_p, se2b_p) = prepared

    B = x.shape[0]
    x2d = x.reshape(B, -1).astype(jnp.bfloat16)
    assert x2d.shape[1] == INPUT_SIZE

    # Batch tile: multiple of 16 (bf16 sublane packing). For B >= 32, force at
    # least 2 grid steps so both TensorCores get work on v7x and the batch
    # pipeline overlaps DMA with compute.
    b16 = _round_up(B, 16)
    if b16 >= 32:
        tb = min(tile_b, _round_up(pl.cdiv(b16, 2), 16))
    else:
        tb = b16
    b_pad = _round_up(B, tb)
    if b_pad != B:
        x2d = jnp.pad(x2d, ((0, b_pad - B), (0, 0)))
    grid = (b_pad // tb,)

    batch_spec = lambda cols: pl.BlockSpec((tb, cols), lambda i: (i, 0))
    # Constant-index operands stay resident in VMEM; single-buffered.
    resident = lambda shape: pl.BlockSpec(shape, lambda i: (0, 0),
                                          pipeline_mode=pl.Buffered(1))

    weight_bytes = sum(int(a.size) * a.dtype.itemsize for a in prepared)
    flops = 2 * b_pad * (INPUT_SIZE * HIDDEN + 2 * HIDDEN * SE_PAD
                         + HIDDEN * HIDDEN + 2 * HIDDEN * SE_PAD)
    cost = pl.CostEstimate(
        flops=flops,
        transcendentals=2 * b_pad * HIDDEN,                   # two sigmoid gates
        bytes_accessed=(b_pad * INPUT_SIZE * 2 + weight_bytes
                        + b_pad * HIDDEN * 2),                # bf16 in + out
    )

    out = pl.pallas_call(
        _shared_subnetwork_kernel,
        out_shape=jax.ShapeDtypeStruct((b_pad, HIDDEN), jnp.bfloat16),
        grid=grid,
        in_specs=[
            batch_spec(INPUT_SIZE),                 # x tile (pipelined)
            resident((INPUT_SIZE, HIDDEN)),         # W1
            resident((1, HIDDEN)),                  # b1
            resident((HIDDEN, SE_PAD)),             # se1_l1 (padded)
            resident((SE_PAD, HIDDEN)),             # se1_l2 (padded)
            resident((HIDDEN, HIDDEN)),             # W2
            resident((1, HIDDEN)),                  # b2
            resident((HIDDEN, SE_PAD)),             # se2_l1 (padded)
            resident((SE_PAD, HIDDEN)),             # se2_l2 (padded)
        ],
        out_specs=batch_spec(HIDDEN),
        compiler_params=pltpu.CompilerParams(
            dimension_semantics=("parallel",),
            vmem_limit_bytes=32 << 20,              # safe on v7x (64 MiB phys)
        ),
        cost_estimate=cost,
    )(x2d, w1_t, b1_2d, se1a_p, se1b_p, w2_t, b2_2d, se2a_p, se2b_p)

    # Slice only when padding was actually added (avoid a full-output copy).
    return out if b_pad == B else out[:B]


def init_params(key):
    """Deterministic parameter init (PyTorch Linear shapes: weight (out, in))."""
    ks = jax.random.split(key, 8)

    def uni(k, shape, fan_in):
        bound = 1.0 / jnp.sqrt(fan_in)
        return jax.random.uniform(k, shape, jnp.float32, -bound, bound)

    w1 = uni(ks[0], (HIDDEN, INPUT_SIZE), INPUT_SIZE)      # linear1.weight
    b1 = uni(ks[1], (HIDDEN,), INPUT_SIZE)                 # linear1.bias
    se1a = uni(ks[2], (REDUCED, HIDDEN), HIDDEN)           # se1_l1.weight
    se1b = uni(ks[3], (HIDDEN, REDUCED), REDUCED)          # se1_l2.weight
    w2 = uni(ks[4], (HIDDEN, HIDDEN), HIDDEN)              # linear2.weight
    b2 = uni(ks[5], (HIDDEN,), HIDDEN)                     # linear2.bias
    se2a = uni(ks[6], (REDUCED, HIDDEN), HIDDEN)           # se2_l1.weight
    se2b = uni(ks[7], (HIDDEN, REDUCED), REDUCED)          # se2_l2.weight
    return (w1, b1, se1a, se1b, w2, b2, se2a, se2b)


def _reference_forward_f32(x, params):
    """Pure-JAX f32 reference matching the PyTorch module exactly."""
    (w1, b1, se1a, se1b, w2, b2, se2a, se2b) = params
    x = x.reshape(x.shape[0], -1)
    h1 = jax.nn.relu(x @ w1.T + b1)
    g1 = jax.nn.sigmoid(jax.nn.relu(h1 @ se1a.T) @ se1b.T)
    h1 = h1 * g1
    h2 = jax.nn.relu(h1 @ w2.T + b2)
    g2 = jax.nn.sigmoid(jax.nn.relu(h2 @ se2a.T) @ se2b.T)
    return h2 * g2


def _reference_forward_bf16(x, params):
    """Reference mimicking the kernel numerics (bf16 inputs/gating, f32 accum)."""
    (w1, b1, se1a, se1b, w2, b2, se2a, se2b) = params
    bf = lambda a: a.astype(jnp.bfloat16)
    dot = lambda a, b: jnp.dot(bf(a), bf(b), preferred_element_type=jnp.float32)
    x = x.reshape(x.shape[0], -1)
    h1 = jnp.maximum(dot(x, w1.T) + b1, 0.0)
    g1 = jax.nn.sigmoid(dot(jnp.maximum(dot(h1, se1a.T), 0.0), se1b.T))
    h1g = bf(h1) * bf(g1)
    h2 = jnp.maximum(
        jnp.dot(h1g, bf(w2.T), preferred_element_type=jnp.float32) + b2, 0.0)
    g2 = jax.nn.sigmoid(dot(jnp.maximum(dot(h2, se2a.T), 0.0), se2b.T))
    return (bf(h2) * bf(g2)).astype(jnp.float32)


if __name__ == "__main__":
    key = jax.random.PRNGKey(0)
    pkey, xkey = jax.random.split(key)
    params = init_params(pkey)
    prepared = prepare_params(params)   # transpose/cast/pad once, reused per call

    # Input like MNIST images: (batch, 1, 28, 28) -> flattened to (batch, 784)
    batch = 8
    x = jax.random.normal(xkey, (batch, 1, 28, 28), jnp.float32)

    out = jax.block_until_ready(shared_subnetwork_forward(x, prepared))
    assert out.shape == (batch, HIDDEN)
    assert out.dtype == jnp.bfloat16
    out_f32 = out.astype(jnp.float32)

    ref_bf16 = _reference_forward_bf16(x, params)
    ref_f32 = _reference_forward_f32(x, params)
    assert jnp.allclose(out_f32, ref_bf16, atol=2e-2, rtol=2e-2), \
        "mismatch vs bf16 reference"
    assert jnp.allclose(out_f32, ref_f32, atol=5e-2, rtol=5e-2), \
        "mismatch vs f32 reference"

    # Multi-step grid + batch padding + in-kernel 2-sub-tile interleave path.
    x_big = jax.random.normal(xkey, (300, 1, 28, 28), jnp.float32)
    out_big = jax.block_until_ready(
        shared_subnetwork_forward(x_big, prepared, tile_b=128))
    assert out_big.shape == (300, HIDDEN)
    assert jnp.allclose(out_big.astype(jnp.float32),
                        _reference_forward_bf16(x_big, params),
                        atol=2e-2, rtol=2e-2), "mismatch on multi-tile batch"

    # Default-tile path (tb=512, grid=2) exercising the megacore-friendly split.
    x_huge = jax.random.normal(xkey, (1024, 1, 28, 28), jnp.float32)
    out_huge = jax.block_until_ready(shared_subnetwork_forward(x_huge, prepared))
    assert out_huge.shape == (1024, HIDDEN)
    assert jnp.allclose(out_huge.astype(jnp.float32),
                        _reference_forward_bf16(x_huge, params),
                        atol=2e-2, rtol=2e-2), "mismatch on large batch"

    print("KERNEL_OK")
</pallas_src>

<mosaic_0001>
module attributes {stable_mosaic.version = 11 : i64} {
  func.func @_shared_subnetwork_kernel(%arg0: i32, %arg1: memref<16x784xbf16, #tpu.memory_space<vmem>>, %arg2: memref<784x400xbf16, #tpu.memory_space<vmem>>, %arg3: memref<1x400xf32, #tpu.memory_space<vmem>>, %arg4: memref<400x128xbf16, #tpu.memory_space<vmem>>, %arg5: memref<128x400xbf16, #tpu.memory_space<vmem>>, %arg6: memref<400x400xbf16, #tpu.memory_space<vmem>>, %arg7: memref<1x400xf32, #tpu.memory_space<vmem>>, %arg8: memref<400x128xbf16, #tpu.memory_space<vmem>>, %arg9: memref<128x400xbf16, #tpu.memory_space<vmem>>, %arg10: memref<16x400xbf16, #tpu.memory_space<vmem>>) attributes {dimension_semantics = [#tpu.dimension_semantics<parallel>], iteration_bounds = array<i64: 1>, scalar_prefetch = 0 : i64, scratch_operands = 0 : i64, tpu.core_type = #tpu.core_type<tc>, window_params = [{transform_indices = @transform_0, window_bounds = array<i64: 16, 784>}, {pipeline_mode = #tpu.pipeline_mode<synchronous>, transform_indices = @transform_1, window_bounds = array<i64: 784, 400>}, {pipeline_mode = #tpu.pipeline_mode<synchronous>, transform_indices = @transform_2, window_bounds = array<i64: 1, 400>}, {pipeline_mode = #tpu.pipeline_mode<synchronous>, transform_indices = @transform_3, window_bounds = array<i64: 400, 128>}, {pipeline_mode = #tpu.pipeline_mode<synchronous>, transform_indices = @transform_4, window_bounds = array<i64: 128, 400>}, {pipeline_mode = #tpu.pipeline_mode<synchronous>, transform_indices = @transform_5, window_bounds = array<i64: 400, 400>}, {pipeline_mode = #tpu.pipeline_mode<synchronous>, transform_indices = @transform_6, window_bounds = array<i64: 1, 400>}, {pipeline_mode = #tpu.pipeline_mode<synchronous>, transform_indices = @transform_7, window_bounds = array<i64: 400, 128>}, {pipeline_mode = #tpu.pipeline_mode<synchronous>, transform_indices = @transform_8, window_bounds = array<i64: 128, 400>}, {transform_indices = @transform_9, window_bounds = array<i64: 16, 400>}]} {
    %c0 = arith.constant 0 : index
    %c0_0 = arith.constant 0 : index
    %0 = vector.load %arg2[%c0, %c0_0] : memref<784x400xbf16, #tpu.memory_space<vmem>>, vector<784x400xbf16>
    %c0_1 = arith.constant 0 : index
    %c0_2 = arith.constant 0 : index
    %1 = vector.load %arg3[%c0_1, %c0_2] : memref<1x400xf32, #tpu.memory_space<vmem>>, vector<1x400xf32>
    %c0_3 = arith.constant 0 : index
    %c0_4 = arith.constant 0 : index
    %2 = vector.load %arg4[%c0_3, %c0_4] : memref<400x128xbf16, #tpu.memory_space<vmem>>, vector<400x128xbf16>
    %c0_5 = arith.constant 0 : index
    %c0_6 = arith.constant 0 : index
    %3 = vector.load %arg5[%c0_5, %c0_6] : memref<128x400xbf16, #tpu.memory_space<vmem>>, vector<128x400xbf16>
    %c0_7 = arith.constant 0 : index
    %c0_8 = arith.constant 0 : index
    %4 = vector.load %arg6[%c0_7, %c0_8] : memref<400x400xbf16, #tpu.memory_space<vmem>>, vector<400x400xbf16>
    %c0_9 = arith.constant 0 : index
    %c0_10 = arith.constant 0 : index
    %5 = vector.load %arg7[%c0_9, %c0_10] : memref<1x400xf32, #tpu.memory_space<vmem>>, vector<1x400xf32>
    %c0_11 = arith.constant 0 : index
    %c0_12 = arith.constant 0 : index
    %6 = vector.load %arg8[%c0_11, %c0_12] : memref<400x128xbf16, #tpu.memory_space<vmem>>, vector<400x128xbf16>
    %c0_13 = arith.constant 0 : index
    %c0_14 = arith.constant 0 : index
    %7 = vector.load %arg9[%c0_13, %c0_14] : memref<128x400xbf16, #tpu.memory_space<vmem>>, vector<128x400xbf16>
    %c0_15 = arith.constant 0 : index
    %c0_16 = arith.constant 0 : index
    %8 = vector.load %arg1[%c0_15, %c0_16] : memref<16x784xbf16, #tpu.memory_space<vmem>>, vector<16x784xbf16>
    %cst = arith.constant dense<0.000000e+00> : vector<16x400xf32>
    %9 = tpu.matmul %8, %0, %cst {dimension_numbers = #tpu.dot_dimension_numbers<[1], [0], [0], [1], [0, 0, 1, 1], [], []>} : vector<16x784xbf16>, vector<784x400xbf16>, vector<16x400xf32> -> vector<16x400xf32>
    %10 = vector.broadcast %1 : vector<1x400xf32> to vector<16x400xf32>
    %11 = arith.addf %9, %10 : vector<16x400xf32>
    %cst_17 = arith.constant 0.000000e+00 : f32
    %12 = vector.broadcast %cst_17 : f32 to vector<16x400xf32>
    %13 = arith.maximumf %11, %12 : vector<16x400xf32>
    %14 = arith.truncf %13 : vector<16x400xf32> to vector<16x400xbf16>
    %cst_18 = arith.constant dense<0.000000e+00> : vector<16x128xf32>
    %15 = tpu.matmul %14, %2, %cst_18 {dimension_numbers = #tpu.dot_dimension_numbers<[1], [0], [0], [1], [0, 0, 1, 1], [], []>} : vector<16x400xbf16>, vector<400x128xbf16>, vector<16x128xf32> -> vector<16x128xf32>
    %cst_19 = arith.constant 0.000000e+00 : f32
    %16 = vector.broadcast %cst_19 : f32 to vector<16x128xf32>
    %17 = arith.maximumf %15, %16 : vector<16x128xf32>
    %18 = arith.truncf %17 : vector<16x128xf32> to vector<16x128xbf16>
    %cst_20 = arith.constant dense<0.000000e+00> : vector<16x400xf32>
    %19 = tpu.matmul %18, %3, %cst_20 {dimension_numbers = #tpu.dot_dimension_numbers<[1], [0], [0], [1], [0, 0, 1, 1], [], []>} : vector<16x128xbf16>, vector<128x400xbf16>, vector<16x400xf32> -> vector<16x400xf32>
    %20 = arith.negf %19 : vector<16x400xf32>
    %21 = math.exp %20 : vector<16x400xf32>
    %cst_21 = arith.constant 1.000000e+00 : f32
    %22 = vector.broadcast %cst_21 : f32 to vector<16x400xf32>
    %23 = arith.addf %22, %21 : vector<16x400xf32>
    %24 = arith.divf %22, %23 : vector<16x400xf32>
    %25 = arith.truncf %24 : vector<16x400xf32> to vector<16x400xbf16>
    %26 = arith.mulf %14, %25 : vector<16x400xbf16>
    %cst_22 = arith.constant dense<0.000000e+00> : vector<16x400xf32>
    %27 = tpu.matmul %26, %4, %cst_22 {dimension_numbers = #tpu.dot_dimension_numbers<[1], [0], [0], [1], [0, 0, 1, 1], [], []>} : vector<16x400xbf16>, vector<400x400xbf16>, vector<16x400xf32> -> vector<16x400xf32>
    %28 = vector.broadcast %5 : vector<1x400xf32> to vector<16x400xf32>
    %29 = arith.addf %27, %28 : vector<16x400xf32>
    %cst_23 = arith.constant 0.000000e+00 : f32
    %30 = vector.broadcast %cst_23 : f32 to vector<16x400xf32>
    %31 = arith.maximumf %29, %30 : vector<16x400xf32>
    %32 = arith.truncf %31 : vector<16x400xf32> to vector<16x400xbf16>
    %cst_24 = arith.constant dense<0.000000e+00> : vector<16x128xf32>
    %33 = tpu.matmul %32, %6, %cst_24 {dimension_numbers = #tpu.dot_dimension_numbers<[1], [0], [0], [1], [0, 0, 1, 1], [], []>} : vector<16x400xbf16>, vector<400x128xbf16>, vector<16x128xf32> -> vector<16x128xf32>
    %cst_25 = arith.constant 0.000000e+00 : f32
    %34 = vector.broadcast %cst_25 : f32 to vector<16x128xf32>
    %35 = arith.maximumf %33, %34 : vector<16x128xf32>
    %36 = arith.truncf %35 : vector<16x128xf32> to vector<16x128xbf16>
    %cst_26 = arith.constant dense<0.000000e+00> : vector<16x400xf32>
    %37 = tpu.matmul %36, %7, %cst_26 {dimension_numbers = #tpu.dot_dimension_numbers<[1], [0], [0], [1], [0, 0, 1, 1], [], []>} : vector<16x128xbf16>, vector<128x400xbf16>, vector<16x400xf32> -> vector<16x400xf32>
    %38 = arith.negf %37 : vector<16x400xf32>
    %39 = math.exp %38 : vector<16x400xf32>
    %cst_27 = arith.constant 1.000000e+00 : f32
    %40 = vector.broadcast %cst_27 : f32 to vector<16x400xf32>
    %41 = arith.addf %40, %39 : vector<16x400xf32>
    %42 = arith.divf %40, %41 : vector<16x400xf32>
    %43 = arith.truncf %42 : vector<16x400xf32> to vector<16x400xbf16>
    %44 = arith.mulf %32, %43 : vector<16x400xbf16>
    %c0_28 = arith.constant 0 : index
    %c0_29 = arith.constant 0 : index
    %45 = vector.load %arg10[%c0_28, %c0_29] : memref<16x400xbf16, #tpu.memory_space<vmem>>, vector<16x400xbf16>
    tpu.vector_store %arg10[%c0_28, %c0_29], %44 {strides = array<i32>} : memref<16x400xbf16, #tpu.memory_space<vmem>>, vector<16x400xbf16>,
    return
  }
  func.func @transform_0(%arg0: i32) -> (i32, i32) {
    %c0_i32 = arith.constant 0 : i32
    %c0_i32_0 = arith.constant 0 : i32
    return %arg0, %c0_i32 : i32, i32
  }
  func.func @transform_1(%arg0: i32) -> (i32, i32) {
    %c0_i32 = arith.constant 0 : i32
    %c0_i32_0 = arith.constant 0 : i32
    %c0_i32_1 = arith.constant 0 : i32
    return %c0_i32, %c0_i32_0 : i32, i32
  }
  func.func @transform_2(%arg0: i32) -> (i32, i32) {
    %c0_i32 = arith.constant 0 : i32
    %c0_i32_0 = arith.constant 0 : i32
    %c0_i32_1 = arith.constant 0 : i32
    return %c0_i32, %c0_i32_0 : i32, i32
  }
  func.func @transform_3(%arg0: i32) -> (i32, i32) {
    %c0_i32 = arith.constant 0 : i32
    %c0_i32_0 = arith.constant 0 : i32
    %c0_i32_1 = arith.constant 0 : i32
    return %c0_i32, %c0_i32_0 : i32, i32
  }
  func.func @transform_4(%arg0: i32) -> (i32, i32) {
    %c0_i32 = arith.constant 0 : i32
    %c0_i32_0 = arith.constant 0 : i32
    %c0_i32_1 = arith.constant 0 : i32
    return %c0_i32, %c0_i32_0 : i32, i32
  }
  func.func @transform_5(%arg0: i32) -> (i32, i32) {
    %c0_i32 = arith.constant 0 : i32
    %c0_i32_0 = arith.constant 0 : i32
    %c0_i32_1 = arith.constant 0 : i32
    return %c0_i32, %c0_i32_0 : i32, i32
  }
  func.func @transform_6(%arg0: i32) -> (i32, i32) {
    %c0_i32 = arith.constant 0 : i32
    %c0_i32_0 = arith.constant 0 : i32
    %c0_i32_1 = arith.constant 0 : i32
    return %c0_i32, %c0_i32_0 : i32, i32
  }
  func.func @transform_7(%arg0: i32) -> (i32, i32) {
    %c0_i32 = arith.constant 0 : i32
    %c0_i32_0 = arith.constant 0 : i32
    %c0_i32_1 = arith.constant 0 : i32
    return %c0_i32, %c0_i32_0 : i32, i32
  }
  func.func @transform_8(%arg0: i32) -> (i32, i32) {
    %c0_i32 = arith.constant 0 : i32
    %c0_i32_0 = arith.constant 0 : i32
    %c0_i32_1 = arith.constant 0 : i32
    return %c0_i32, %c0_i32_0 : i32, i32
  }
  func.func @transform_9(%arg0: i32) -> (i32, i32) {
    %c0_i32 = arith.constant 0 : i32
    %c0_i32_0 = arith.constant 0 : i32
    return %arg0, %c0_i32 : i32, i32
  }
}

</mosaic_0001>

<bundles_post_ra>
// kernel: shared_subnetwork_forward.1
= control target key start
LH: loop header
LB: loop body
LE: loop exit
PB: predicated region body
PF: predicated region fallthrough
CT: control target
= control target key end

     0   :  { %vm1539_vm0 = vcmask 130048   ;;  %vm3708_vm1 = vcmask 1043456   ;;  %vm3709_vm2 = vcmask 130052   ;;  %s6331_s1 = inlined_call_operand.vmem [shape: bf16[784,400], index: 1, kind: input, shape index: {}]   ;;  %s6332_s0 = inlined_call_operand.vmem [shape: bf16[16,784], index: 0, kind: input, shape index: {}]   ;;  %s6333_s3 = inlined_call_operand.vmem [shape: bf16[400,128], index: 3, kind: input, shape index: {}]   ;;  %s6334_s4 = inlined_call_operand.vmem [shape: bf16[128,400], index: 4, kind: input, shape index: {}]   ;;  %s6335_s2 = inlined_call_operand.vmem [shape: f32[1,400], index: 2, kind: input, shape index: {}]   ;;  %s6336_s5 = inlined_call_operand.vmem [shape: bf16[400,400], index: 5, kind: input, shape index: {}]   ;;  %s6337_s7 = inlined_call_operand.vmem [shape: bf16[400,128], index: 7, kind: input, shape index: {}]   ;;  %s6338_s8 = inlined_call_operand.vmem [shape: bf16[128,400], index: 8, kind: input, shape index: {}]   ;;  %s6339_s6 = inlined_call_operand.vmem [shape: f32[1,400], index: 6, kind: input, shape index: {}]   ;;  %s6340_s9 = inlined_call_operand.vmem [shape: bf16[16,400], index: 9, kind: output, shape index: {}]  }
   0x1   :  { %v4254_v0 = vld [vmem:[%s6331_s1 + $0x4] ss:$16 sps:$4 sm:$0xff]   ;;  %v4256_v1 = vld [vmem:[%s6331_s1 + $0xc] ss:$16 sps:$4 sm:$0xff]   ;;  %v4258_v2 = vld [vmem:[%s6331_s1] ss:$16 sps:$4 sm:$0xff]  }
   0x2   :  { %1543 = vmatprep.subr.bf16.mxu0 %v4254_v0  ;;  %v4259_v3 = vld [vmem:[%s6331_s1 + $0x8] ss:$16 sps:$4 sm:$0xff]   ;;  %1715 = vmatprep.subr.bf16.mxu1 %v4256_v1  ;;  %v4260_v4 = vld [vmem:[%s6331_s1 + $0x24] ss:$16 sps:$4 sm:$0xff]   ;;  %v4262_v5 = vld [vmem:[%s6331_s1 + $0x2c] ss:$16 sps:$4 sm:$0xff]  }
   0x3   :  { %1544 = vmatpush1.bf16.msra.mxu0 %v4258_v2  ;;  %1716 = vmatpush1.bf16.msra.mxu1 %v4259_v3  ;;  %v4264_v6 = vld [vmem:[%s6331_s1 + $0x20] ss:$16 sps:$4 sm:$0xff]   ;;  %v4265_v7 = vld [vmem:[%s6331_s1 + $0x28] ss:$16 sps:$4 sm:$0xff]   ;;  %v4266_v8 = vld [vmem:[%s6331_s1 + $0x44] ss:$16 sps:$4 sm:$0xff]  }
   0x4   :  { %1545 = vmatprep.subr.bf16.mxu0 %v4260_v4  ;;  %1717 = vmatprep.subr.bf16.mxu1 %v4262_v5  ;;  %v4268_v9 = vld [vmem:[%s6331_s1 + $0x4c] ss:$16 sps:$4 sm:$0xff]   ;;  %v4270_v10 = vld [vmem:[%s6331_s1 + $0x40] ss:$16 sps:$4 sm:$0xff]   ;;  %v4271_v11 = vld [vmem:[%s6331_s1 + $0x48] ss:$16 sps:$4 sm:$0xff]  }
   0x5   :  { %v4272_v12 = vld [vmem:[%s6331_s1 + $0x64] ss:$16 sps:$4 sm:$0xff]   ;;  %v4274_v13 = vld [vmem:[%s6331_s1 + $0x6c] ss:$16 sps:$4 sm:$0xff]   ;;  %v4276_v14 = vld [vmem:[%s6331_s1 + $0x60] ss:$16 sps:$4 sm:$0xff]  }
   0x6   :  { %v4277_v15 = vld [vmem:[%s6331_s1 + $0x68] ss:$16 sps:$4 sm:$0xff]   ;;  %v4278_v16 = vld [vmem:[%s6331_s1 + $0x84] ss:$16 sps:$4 sm:$0xff]   ;;  %v4280_v17 = vld [vmem:[%s6331_s1 + $0x8c] ss:$16 sps:$4 sm:$0xff]  }
   0x7   :  { %1546 = vmatpush1.bf16.msra.mxu0 %v4264_v6  ;;  %1718 = vmatpush1.bf16.msra.mxu1 %v4265_v7  ;;  %v4282_v18 = vld [vmem:[%s6331_s1 + $0x80] ss:$16 sps:$4 sm:$0xff]   ;;  %v4283_v19 = vld [vmem:[%s6331_s1 + $0x88] ss:$16 sps:$4 sm:$0xff]   ;;  %v4284_v20 = vld [vmem:[%s6331_s1 + $0xa4] ss:$16 sps:$4 sm:$0xff]  }
   0x8   :  { %1547 = vmatprep.subr.bf16.mxu0 %v4266_v8  ;;  %1719 = vmatprep.subr.bf16.mxu1 %v4268_v9  ;;  %v4286_v21 = vld [vmem:[%s6331_s1 + $0xac] ss:$16 sps:$4 sm:$0xff]   ;;  %v4288_v22 = vld [vmem:[%s6331_s1 + $0xa0] ss:$16 sps:$4 sm:$0xff]   ;;  %v4289_v23 = vld [vmem:[%s6331_s1 + $0xa8] ss:$16 sps:$4 sm:$0xff]  }
   0x9   :  { %v4290_v24 = vld [vmem:[%s6331_s1 + $0xc4] ss:$16 sps:$4 sm:$0xff]   ;;  %v4292_v25 = vld [vmem:[%s6331_s1 + $0xcc] ss:$16 sps:$4 sm:$0xff]   ;;  %v4294_v26 = vld [vmem:[%s6331_s1 + $0xc0] ss:$16 sps:$4 sm:$0xff]  }
   0xa   :  { %v4295_v27 = vld [vmem:[%s6331_s1 + $0xc8] ss:$16 sps:$4 sm:$0xff]   ;;  %v4296_v28 = vld [vmem:[%s6331_s1 + $0xe4] ss:$16 sps:$4 sm:$0xff]   ;;  %v4298_v29 = vld [vmem:[%s6331_s1 + $0xec] ss:$16 sps:$4 sm:$0xff]  }
   0xb   :  { %1548 = vmatpush1.bf16.msra.mxu0 %v4270_v10  ;;  %1720 = vmatpush1.bf16.msra.mxu1 %v4271_v11  ;;  %v4300_v30 = vld [vmem:[%s6331_s1 + $0xe0] ss:$16 sps:$4 sm:$0xff]   ;;  %v4301_v31 = vld [vmem:[%s6331_s1 + $0xe8] ss:$16 sps:$4 sm:$0xff]   ;;  %v4302_v32 = vld [vmem:[%s6331_s1 + $0x104] ss:$16 sps:$4 sm:$0xff]  }
   0xc   :  { %1549 = vmatprep.subr.bf16.mxu0 %v4272_v12  ;;  %1721 = vmatprep.subr.bf16.mxu1 %v4274_v13  ;;  %v4304_v33 = vld [vmem:[%s6331_s1 + $0x10c] ss:$16 sps:$4 sm:$0xff]   ;;  %v4306_v34 = vld [vmem:[%s6331_s1 + $0x100] ss:$16 sps:$4 sm:$0xff]   ;;  %v4307_v35 = vld [vmem:[%s6331_s1 + $0x108] ss:$16 sps:$4 sm:$0xff]  }
   0xd   :  { %v4308_v36 = vld [vmem:[%s6331_s1 + $0x124] ss:$16 sps:$4 sm:$0xff]   ;;  %v4310_v37 = vld [vmem:[%s6331_s1 + $0x12c] ss:$16 sps:$4 sm:$0xff]   ;;  %v4312_v38 = vld [vmem:[%s6331_s1 + $0x120] ss:$16 sps:$4 sm:$0xff]  }
   0xe   :  { %v4313_v39 = vld [vmem:[%s6331_s1 + $0x128] ss:$16 sps:$4 sm:$0xff]   ;;  %v4314_v40 = vld [vmem:[%s6331_s1 + $0x144] ss:$16 sps:$4 sm:$0xff]   ;;  %v4316_v41 = vld [vmem:[%s6331_s1 + $0x14c] ss:$16 sps:$4 sm:$0xff]  }
   0xf   :  { %1550 = vmatpush1.bf16.msra.mxu0 %v4276_v14  ;;  %1722 = vmatpush1.bf16.msra.mxu1 %v4277_v15  ;;  %v4318_v42 = vld [vmem:[%s6331_s1 + $0x140] ss:$16 sps:$4 sm:$0xff]   ;;  %v4319_v43 = vld [vmem:[%s6331_s1 + $0x148] ss:$16 sps:$4 sm:$0xff]   ;;  %v4320_v44 = vld [vmem:[%s6331_s1 + $0x164] ss:$16 sps:$4 sm:$0xff]  }
  0x10   :  { %1551 = vmatprep.subr.bf16.mxu0 %v4278_v16  ;;  %1723 = vmatprep.subr.bf16.mxu1 %v4280_v17  ;;  %v4322_v45 = vld [vmem:[%s6331_s1 + $0x16c] ss:$16 sps:$4 sm:$0xff]   ;;  %v4324_v46 = vld [vmem:[%s6331_s1 + $0x160] ss:$16 sps:$4 sm:$0xff]   ;;  %v4325_v47 = vld [vmem:[%s6331_s1 + $0x168] ss:$16 sps:$4 sm:$0xff]  }
  0x11   :  { %v4352_v48 = vld [vmem:[%s6332_s0 + $0x4] ss:$28 sps:$4 sm:$0xff]   ;;  %v4328_v50 = vld [vmem:[%s6331_s1 + $0x18c] ss:$16 sps:$4 sm:$0xff]   ;;  %v4331_v52 = vld [vmem:[%s6331_s1 + $0x188] ss:$16 sps:$4 sm:$0xff]  }
  0x12   :  { %v4326_v49 = vld [vmem:[%s6331_s1 + $0x184] ss:$16 sps:$4 sm:$0xff]   ;;  %1575 = vmatprep.mubr.bf16.mxu0 %v4352_v48  ;;  %1747 = vmatprep.mubr.bf16.mxu1 %v4352_v48  ;;  %v4330_v51 = vld [vmem:[%s6331_s1 + $0x180] ss:$16 sps:$4 sm:$0xff]   ;;  %v4334_v54 = vld [vmem:[%s6331_s1 + $0x1ac] ss:$16 sps:$4 sm:$0xff]  }
  0x13   :  { %1552 = vmatpush1.bf16.msra.mxu0 %v4282_v18  ;;  %1724 = vmatpush1.bf16.msra.mxu1 %v4283_v19  ;;  %v4332_v53 = vld [vmem:[%s6331_s1 + $0x1a4] ss:$16 sps:$4 sm:$0xff]   ;;  %v4336_v55 = vld [vmem:[%s6331_s1 + $0x1a0] ss:$16 sps:$4 sm:$0xff]   ;;  %v4337_v56 = vld [vmem:[%s6331_s1 + $0x1a8] ss:$16 sps:$4 sm:$0xff]  }
  0x14   :  { %1553 = vmatprep.subr.bf16.mxu0 %v4284_v20  ;;  %1725 = vmatprep.subr.bf16.mxu1 %v4286_v21  ;;  %v4338_v57 = vld [vmem:[%s6331_s1 + $0x1c4] ss:$16 sps:$4 sm:$0xff]   ;;  %v4340_v58 = vld [vmem:[%s6331_s1 + $0x1cc] ss:$16 sps:$4 sm:$0xff]   ;;  %v4342_v59 = vld [vmem:[%s6331_s1 + $0x1c0] ss:$16 sps:$4 sm:$0xff]  }
  0x15   :  { %v4343_v60 = vld [vmem:[%s6331_s1 + $0x1c8] ss:$16 sps:$4 sm:$0xff]   ;;  %v4344_v61 = vld [vmem:[%s6331_s1 + $0x1e4] ss:$16 sps:$4 sm:$0xff]   ;;  %v4346_v62 = vld [vmem:[%s6331_s1 + $0x1ec] ss:$16 sps:$4 sm:$0xff]  }
  0x16   :  { %v4348_v63 = vld [vmem:[%s6331_s1 + $0x1e0] ss:$16 sps:$4 sm:$0xff]   ;;  %v4349_v0 = vld [vmem:[%s6331_s1 + $0x1e8] ss:$16 sps:$4 sm:$0xff]   ;;  %v4355_v1 = vld [vmem:[%s6331_s1 + $0x204] ss:$16 sps:$4 sm:$0xff]  }
  0x17   :  { %1554 = vmatpush1.bf16.msra.mxu0 %v4288_v22  ;;  %1726 = vmatpush1.bf16.msra.mxu1 %v4289_v23  ;;  %v4358_v2 = vld [vmem:[%s6331_s1 + $0x20c] ss:$16 sps:$4 sm:$0xff]   ;;  %v4353_v4 = vld [vmem:[%s6331_s1 + $0x200] ss:$16 sps:$4 sm:$0xff]   ;;  %v4356_v5 = vld [vmem:[%s6331_s1 + $0x208] ss:$16 sps:$4 sm:$0xff]  }
  0x18   :  { %1555 = vmatprep.subr.bf16.mxu0 %v4290_v24  ;;  %1727 = vmatprep.subr.bf16.mxu1 %v4292_v25  ;;  %v4350_v3 = vld [vmem:[%s6332_s0] ss:$28 sps:$4 sm:$0xff]   ;;  %v4361_v6 = vld [vmem:[%s6331_s1 + $0x224] ss:$16 sps:$4 sm:$0xff]   ;;  %v4362_v9 = vld [vmem:[%s6331_s1 + $0x228] ss:$16 sps:$4 sm:$0xff]  }
  0x19   :  { %v4364_v7 = vld [vmem:[%s6331_s1 + $0x22c] ss:$16 sps:$4 sm:$0xff]   ;;  %v4359_v8 = vld [vmem:[%s6331_s1 + $0x220] ss:$16 sps:$4 sm:$0xff]   ;;  %v4367_v10 = vld [vmem:[%s6331_s1 + $0x244] ss:$16 sps:$4 sm:$0xff]  }
  0x1a   :  { %v4370_v11 = vld [vmem:[%s6331_s1 + $0x24c] ss:$16 sps:$4 sm:$0xff]   ;;  %v4365_v12 = vld [vmem:[%s6331_s1 + $0x240] ss:$16 sps:$4 sm:$0xff]   ;;  %v4368_v13 = vld [vmem:[%s6331_s1 + $0x248] ss:$16 sps:$4 sm:$0xff]  }
  0x1b   :  { %1556 = vmatpush1.bf16.msra.mxu0 %v4294_v26  ;;  %1728 = vmatpush1.bf16.msra.mxu1 %v4295_v27  ;;  %v4373_v14 = vld [vmem:[%s6331_s1 + $0x264] ss:$16 sps:$4 sm:$0xff]   ;;  %v4376_v15 = vld [vmem:[%s6331_s1 + $0x26c] ss:$16 sps:$4 sm:$0xff]   ;;  %v4371_v16 = vld [vmem:[%s6331_s1 + $0x260] ss:$16 sps:$4 sm:$0xff]  }
  0x1c   :  { %1557 = vmatprep.subr.bf16.mxu0 %v4296_v28  ;;  %1729 = vmatprep.subr.bf16.mxu1 %v4298_v29  ;;  %v4374_v17 = vld [vmem:[%s6331_s1 + $0x268] ss:$16 sps:$4 sm:$0xff]   ;;  %v4379_v18 = vld [vmem:[%s6331_s1 + $0x284] ss:$16 sps:$4 sm:$0xff]   ;;  %v4382_v19 = vld [vmem:[%s6331_s1 + $0x28c] ss:$16 sps:$4 sm:$0xff]  }
  0x1d   :  { %v4377_v20 = vld [vmem:[%s6331_s1 + $0x280] ss:$16 sps:$4 sm:$0xff]   ;;  %v4380_v21 = vld [vmem:[%s6331_s1 + $0x288] ss:$16 sps:$4 sm:$0xff]   ;;  %v4385_v22 = vld [vmem:[%s6331_s1 + $0x2a4] ss:$16 sps:$4 sm:$0xff]  }
  0x1e   :  { %v4388_v23 = vld [vmem:[%s6331_s1 + $0x2ac] ss:$16 sps:$4 sm:$0xff]   ;;  %v4383_v24 = vld [vmem:[%s6331_s1 + $0x2a0] ss:$16 sps:$4 sm:$0xff]   ;;  %v4386_v25 = vld [vmem:[%s6331_s1 + $0x2a8] ss:$16 sps:$4 sm:$0xff]  }
  0x1f   :  { %1558 = vmatpush1.bf16.msra.mxu0 %v4300_v30  ;;  %1730 = vmatpush1.bf16.msra.mxu1 %v4301_v31  ;;  %v4391_v26 = vld [vmem:[%s6331_s1 + $0x2c4] ss:$16 sps:$4 sm:$0xff]   ;;  %v4394_v27 = vld [vmem:[%s6331_s1 + $0x2cc] ss:$16 sps:$4 sm:$0xff]   ;;  %v4389_v28 = vld [vmem:[%s6331_s1 + $0x2c0] ss:$16 sps:$4 sm:$0xff]  }
  0x20   :  { %1559 = vmatprep.subr.bf16.mxu0 %v4302_v32  ;;  %1731 = vmatprep.subr.bf16.mxu1 %v4304_v33  ;;  %v4392_v29 = vld [vmem:[%s6331_s1 + $0x2c8] ss:$16 sps:$4 sm:$0xff]   ;;  %v4397_v31 = vld [vmem:[%s6331_s1 + $0x2e4] ss:$16 sps:$4 sm:$0xff]   ;;  %v4400_v32 = vld [vmem:[%s6331_s1 + $0x2ec] ss:$16 sps:$4 sm:$0xff]  }
  0x21   :  { %v4451_v30 = vld [vmem:[%s6332_s0 + $0xc] ss:$28 sps:$4 sm:$0xff]   ;;  %v4395_v33 = vld [vmem:[%s6331_s1 + $0x2e0] ss:$16 sps:$4 sm:$0xff]   ;;  %vm3710_vm3 = vmor %vm3709_vm2, %vm3708_vm1 }
  0x22   :  { %v4424_v48 = vld [vmem:[%s6331_s1 + $0x36c] ss:$16 sps:$4 sm:$0xff]  }
  0x23   :  { %1560 = vmatpush1.bf16.msra.mxu0 %v4306_v34  ;;  %1732 = vmatpush1.bf16.msra.mxu1 %v4307_v35  ;;  %v4398_v34 = vld [vmem:[%s6331_s1 + $0x2e8] ss:$16 sps:$4 sm:$0xff]   ;;  %v4403_v35 = vld [vmem:[%s6331_s1 + $0x304] ss:$16 sps:$4 sm:$0xff]  }
  0x24   :  { %1561 = vmatprep.subr.bf16.mxu0 %v4308_v36  ;;  %1733 = vmatprep.subr.bf16.mxu1 %v4310_v37  ;;  %v4406_v36 = vld [vmem:[%s6331_s1 + $0x30c] ss:$16 sps:$4 sm:$0xff]   ;;  %v4401_v37 = vld [vmem:[%s6331_s1 + $0x300] ss:$16 sps:$4 sm:$0xff]  }
  0x27   :  { %1562 = vmatpush1.bf16.msra.mxu0 %v4312_v38  ;;  %1734 = vmatpush1.bf16.msra.mxu1 %v4313_v39  ;;  %v4404_v38 = vld [vmem:[%s6331_s1 + $0x308] ss:$16 sps:$4 sm:$0xff]   ;;  %v4409_v39 = vld [vmem:[%s6331_s1 + $0x324] ss:$16 sps:$4 sm:$0xff]  }
  0x28   :  { %1563 = vmatprep.subr.bf16.mxu0 %v4314_v40  ;;  %1735 = vmatprep.subr.bf16.mxu1 %v4316_v41  ;;  %v4412_v40 = vld [vmem:[%s6331_s1 + $0x32c] ss:$16 sps:$4 sm:$0xff]   ;;  %v4407_v41 = vld [vmem:[%s6331_s1 + $0x320] ss:$16 sps:$4 sm:$0xff]  }
  0x2b   :  { %1564 = vmatpush1.bf16.msra.mxu0 %v4318_v42  ;;  %1736 = vmatpush1.bf16.msra.mxu1 %v4319_v43  ;;  %v4410_v42 = vld [vmem:[%s6331_s1 + $0x328] ss:$16 sps:$4 sm:$0xff]   ;;  %v4415_v43 = vld [vmem:[%s6331_s1 + $0x344] ss:$16 sps:$4 sm:$0xff]  }
  0x2c   :  { %1565 = vmatprep.subr.bf16.mxu0 %v4320_v44  ;;  %1737 = vmatprep.subr.bf16.mxu1 %v4322_v45  ;;  %v4418_v44 = vld [vmem:[%s6331_s1 + $0x34c] ss:$16 sps:$4 sm:$0xff]   ;;  %v4413_v45 = vld [vmem:[%s6331_s1 + $0x340] ss:$16 sps:$4 sm:$0xff]  }
  0x2f   :  { %1566 = vmatpush1.bf16.msra.mxu0 %v4324_v46  ;;  %1738 = vmatpush1.bf16.msra.mxu1 %v4325_v47  ;;  %v4416_v46 = vld [vmem:[%s6331_s1 + $0x348] ss:$16 sps:$4 sm:$0xff]   ;;  %v4421_v47 = vld [vmem:[%s6331_s1 + $0x364] ss:$16 sps:$4 sm:$0xff]  }
  0x30   :  { %1567 = vmatprep.subr.bf16.mxu0 %v4326_v49  ;;  %1739 = vmatprep.subr.bf16.mxu1 %v4328_v50  ;;  %v4419_v49 = vld [vmem:[%s6331_s1 + $0x360] ss:$16 sps:$4 sm:$0xff]   ;;  %v4422_v50 = vld [vmem:[%s6331_s1 + $0x368] ss:$16 sps:$4 sm:$0xff]  }
  0x33   :  { %1568 = vmatpush1.bf16.msra.mxu0 %v4330_v51  ;;  %1740 = vmatpush1.bf16.msra.mxu1 %v4331_v52  ;;  %v4427_v51 = vld [vmem:[%s6331_s1 + $0x384] ss:$16 sps:$4 sm:$0xff]   ;;  %v4430_v52 = vld [vmem:[%s6331_s1 + $0x38c] ss:$16 sps:$4 sm:$0xff]  }
  0x34   :  { %1569 = vmatprep.subr.bf16.mxu0 %v4332_v53  ;;  %1741 = vmatprep.subr.bf16.mxu1 %v4334_v54  ;;  %v4425_v53 = vld [vmem:[%s6331_s1 + $0x380] ss:$16 sps:$4 sm:$0xff]   ;;  %v4428_v54 = vld [vmem:[%s6331_s1 + $0x388] ss:$16 sps:$4 sm:$0xff]  }
  0x37   :  { %1570 = vmatpush1.bf16.msra.mxu0 %v4336_v55  ;;  %1742 = vmatpush1.bf16.msra.mxu1 %v4337_v56  ;;  %v4433_v55 = vld [vmem:[%s6331_s1 + $0x3a4] ss:$16 sps:$4 sm:$0xff]   ;;  %v4436_v56 = vld [vmem:[%s6331_s1 + $0x3ac] ss:$16 sps:$4 sm:$0xff]  }
  0x38   :  { %1571 = vmatprep.subr.bf16.mxu0 %v4338_v57  ;;  %1743 = vmatprep.subr.bf16.mxu1 %v4340_v58  ;;  %v4431_v57 = vld [vmem:[%s6331_s1 + $0x3a0] ss:$16 sps:$4 sm:$0xff]   ;;  %v4434_v58 = vld [vmem:[%s6331_s1 + $0x3a8] ss:$16 sps:$4 sm:$0xff]  }
  0x3b   :  { %1572 = vmatpush1.bf16.msra.mxu0 %v4342_v59  ;;  %1744 = vmatpush1.bf16.msra.mxu1 %v4343_v60  ;;  %v4439_v59 = vld [vmem:[%s6331_s1 + $0x3c4] ss:$16 sps:$4 sm:$0xff]   ;;  %v4442_v60 = vld [vmem:[%s6331_s1 + $0x3cc] ss:$16 sps:$4 sm:$0xff]  }
  0x3c   :  { %1573 = vmatprep.subr.bf16.mxu0 %v4344_v61  ;;  %1745 = vmatprep.subr.bf16.mxu1 %v4346_v62  ;;  %v4437_v61 = vld [vmem:[%s6331_s1 + $0x3c0] ss:$16 sps:$4 sm:$0xff]   ;;  %v4440_v62 = vld [vmem:[%s6331_s1 + $0x3c8] ss:$16 sps:$4 sm:$0xff]  }
  0x3f   :  { %1574 = vmatpush1.bf16.msra.mxu0 %v4348_v63  ;;  %1746 = vmatpush1.bf16.msra.mxu1 %v4349_v0  ;;  %v4445_v63 = vld [vmem:[%s6331_s1 + $0x3e4] ss:$16 sps:$4 sm:$0xff]   ;;  %v4448_v0 = vld [vmem:[%s6331_s1 + $0x3ec] ss:$16 sps:$4 sm:$0xff]  }
  0x40   :  { %1586 = vmatprep.subr.bf16.mxu0 %v4355_v1  ;;  %1758 = vmatprep.subr.bf16.mxu1 %v4358_v2  ;;  %v4443_v1 = vld [vmem:[%s6331_s1 + $0x3e0] ss:$16 sps:$4 sm:$0xff]   ;;  %v4446_v2 = vld [vmem:[%s6331_s1 + $0x3e8] ss:$16 sps:$4 sm:$0xff]  }
  0x42   :  { %1576 = vmatmul.mubr.bf16.vlgmr.msra.gmra.mrb[0].mxu0 %v4350_v3  ;;  %1748 = vmatmul.mubr.bf16.vlgmr.msra.gmra.mrb[0].mxu1 %v4350_v3  ;;  %v4454_v3 = vld [vmem:[%s6331_s1 + $0x404] ss:$16 sps:$4 sm:$0xff]  }
  0x43   :  { %1587 = vmatpush1.bf16.msra.mxu0 %v4353_v4  ;;  %1759 = vmatpush1.bf16.msra.mxu1 %v4356_v5  ;;  %v4457_v4 = vld [vmem:[%s6331_s1 + $0x40c] ss:$16 sps:$4 sm:$0xff]   ;;  %v4449_v5 = vld [vmem:[%s6332_s0 + $0x8] ss:$28 sps:$4 sm:$0xff]  }
  0x44   :  { %1588 = vmatprep.subr.bf16.mxu0 %v4361_v6  ;;  %1760 = vmatprep.subr.bf16.mxu1 %v4364_v7  ;;  %v4452_v6 = vld [vmem:[%s6331_s1 + $0x400] ss:$16 sps:$4 sm:$0xff]   ;;  %v4455_v7 = vld [vmem:[%s6331_s1 + $0x408] ss:$16 sps:$4 sm:$0xff]  }
  0x45   :  { %1618 = vmatprep.mubr.bf16.mxu0 %v4451_v30  ;;  %1790 = vmatprep.mubr.bf16.mxu1 %v4451_v30  ;;  %v4493_v30 = vld [vmem:[%s6331_s1 + $0x4cc] ss:$16 sps:$4 sm:$0xff]  }
  0x47   :  { %1589 = vmatpush1.bf16.msra.mxu0 %v4359_v8  ;;  %1761 = vmatpush1.bf16.msra.mxu1 %v4362_v9  ;;  %v4460_v8 = vld [vmem:[%s6331_s1 + $0x424] ss:$16 sps:$4 sm:$0xff]   ;;  %v4463_v9 = vld [vmem:[%s6331_s1 + $0x42c] ss:$16 sps:$4 sm:$0xff]  }
  0x48   :  { %1590 = vmatprep.subr.bf16.mxu0 %v4367_v10  ;;  %1762 = vmatprep.subr.bf16.mxu1 %v4370_v11  ;;  %v4458_v10 = vld [vmem:[%s6331_s1 + $0x420] ss:$16 sps:$4 sm:$0xff]   ;;  %v4461_v11 = vld [vmem:[%s6331_s1 + $0x428] ss:$16 sps:$4 sm:$0xff]  }
  0x4b   :  { %1591 = vmatpush1.bf16.msra.mxu0 %v4365_v12  ;;  %1763 = vmatpush1.bf16.msra.mxu1 %v4368_v13  ;;  %v4550_v12 = vld [vmem:[%s6332_s0 + $0x14] ss:$28 sps:$4 sm:$0xff]  }
  0x4c   :  { %1592 = vmatprep.subr.bf16.mxu0 %v4373_v14  ;;  %1764 = vmatprep.subr.bf16.mxu1 %v4376_v15  ;;  %v4466_v13 = vld [vmem:[%s6331_s1 + $0x444] ss:$16 sps:$4 sm:$0xff]   ;;  %v4469_v14 = vld [vmem:[%s6331_s1 + $0x44c] ss:$16 sps:$4 sm:$0xff]   ;;  %v4464_v15 = vld [vmem:[%s6331_s1 + $0x440] ss:$16 sps:$4 sm:$0xff]  }
  0x4f   :  { %1593 = vmatpush1.bf16.msra.mxu0 %v4371_v16  ;;  %1765 = vmatpush1.bf16.msra.mxu1 %v4374_v17  ;;  %v4467_v16 = vld [vmem:[%s6331_s1 + $0x448] ss:$16 sps:$4 sm:$0xff]   ;;  %v4472_v17 = vld [vmem:[%s6331_s1 + $0x464] ss:$16 sps:$4 sm:$0xff]  }
  0x50   :  { %1594 = vmatprep.subr.bf16.mxu0 %v4379_v18  ;;  %1766 = vmatprep.subr.bf16.mxu1 %v4382_v19  ;;  %v4475_v18 = vld [vmem:[%s6331_s1 + $0x46c] ss:$16 sps:$4 sm:$0xff]   ;;  %v4470_v19 = vld [vmem:[%s6331_s1 + $0x460] ss:$16 sps:$4 sm:$0xff]  }
  0x53   :  { %1595 = vmatpush1.bf16.msra.mxu0 %v4377_v20  ;;  %1767 = vmatpush1.bf16.msra.mxu1 %v4380_v21  ;;  %v4473_v20 = vld [vmem:[%s6331_s1 + $0x468] ss:$16 sps:$4 sm:$0xff]   ;;  %v4478_v21 = vld [vmem:[%s6331_s1 + $0x484] ss:$16 sps:$4 sm:$0xff]  }
  0x54   :  { %1596 = vmatprep.subr.bf16.mxu0 %v4385_v22  ;;  %1768 = vmatprep.subr.bf16.mxu1 %v4388_v23  ;;  %v4481_v22 = vld [vmem:[%s6331_s1 + $0x48c] ss:$16 sps:$4 sm:$0xff]   ;;  %v4476_v23 = vld [vmem:[%s6331_s1 + $0x480] ss:$16 sps:$4 sm:$0xff]  }
  0x57   :  { %1597 = vmatpush1.bf16.msra.mxu0 %v4383_v24  ;;  %1769 = vmatpush1.bf16.msra.mxu1 %v4386_v25  ;;  %v4479_v24 = vld [vmem:[%s6331_s1 + $0x488] ss:$16 sps:$4 sm:$0xff]   ;;  %v4484_v25 = vld [vmem:[%s6331_s1 + $0x4a4] ss:$16 sps:$4 sm:$0xff]  }
  0x58   :  { %1598 = vmatprep.subr.bf16.mxu0 %v4391_v26  ;;  %1770 = vmatprep.subr.bf16.mxu1 %v4394_v27  ;;  %v4487_v26 = vld [vmem:[%s6331_s1 + $0x4ac] ss:$16 sps:$4 sm:$0xff]   ;;  %v4482_v27 = vld [vmem:[%s6331_s1 + $0x4a0] ss:$16 sps:$4 sm:$0xff]  }
  0x5b   :  { %1599 = vmatpush1.bf16.msra.mxu0 %v4389_v28  ;;  %1771 = vmatpush1.bf16.msra.mxu1 %v4392_v29  ;;  %v4485_v28 = vld [vmem:[%s6331_s1 + $0x4a8] ss:$16 sps:$4 sm:$0xff]   ;;  %v4490_v29 = vld [vmem:[%s6331_s1 + $0x4c4] ss:$16 sps:$4 sm:$0xff]  }
  0x5c   :  { %1600 = vmatprep.subr.bf16.mxu0 %v4397_v31  ;;  %1772 = vmatprep.subr.bf16.mxu1 %v4400_v32  ;;  %v4488_v31 = vld [vmem:[%s6331_s1 + $0x4c0] ss:$16 sps:$4 sm:$0xff]   ;;  %v4491_v32 = vld [vmem:[%s6331_s1 + $0x4c8] ss:$16 sps:$4 sm:$0xff]  }
  0x5f   :  { %1601 = vmatpush1.bf16.msra.mxu0 %v4395_v33  ;;  %1773 = vmatpush1.bf16.msra.mxu1 %v4398_v34  ;;  %v4496_v33 = vld [vmem:[%s6331_s1 + $0x4e4] ss:$16 sps:$4 sm:$0xff]   ;;  %v4499_v34 = vld [vmem:[%s6331_s1 + $0x4ec] ss:$16 sps:$4 sm:$0xff]  }
  0x60   :  { %1602 = vmatprep.subr.bf16.mxu0 %v4403_v35  ;;  %1774 = vmatprep.subr.bf16.mxu1 %v4406_v36  ;;  %v4494_v35 = vld [vmem:[%s6331_s1 + $0x4e0] ss:$16 sps:$4 sm:$0xff]   ;;  %v4497_v36 = vld [vmem:[%s6331_s1 + $0x4e8] ss:$16 sps:$4 sm:$0xff]  }
  0x63   :  { %1603 = vmatpush1.bf16.msra.mxu0 %v4401_v37  ;;  %1775 = vmatpush1.bf16.msra.mxu1 %v4404_v38  ;;  %v4502_v37 = vld [vmem:[%s6331_s1 + $0x504] ss:$16 sps:$4 sm:$0xff]   ;;  %v4505_v38 = vld [vmem:[%s6331_s1 + $0x50c] ss:$16 sps:$4 sm:$0xff]  }
  0x64   :  { %1604 = vmatprep.subr.bf16.mxu0 %v4409_v39  ;;  %1776 = vmatprep.subr.bf16.mxu1 %v4412_v40  ;;  %v4500_v39 = vld [vmem:[%s6331_s1 + $0x500] ss:$16 sps:$4 sm:$0xff]   ;;  %v4503_v40 = vld [vmem:[%s6331_s1 + $0x508] ss:$16 sps:$4 sm:$0xff]  }
  0x67   :  { %1605 = vmatpush1.bf16.msra.mxu0 %v4407_v41  ;;  %1777 = vmatpush1.bf16.msra.mxu1 %v4410_v42  ;;  %v4508_v41 = vld [vmem:[%s6331_s1 + $0x524] ss:$16 sps:$4 sm:$0xff]   ;;  %v4511_v42 = vld [vmem:[%s6331_s1 + $0x52c] ss:$16 sps:$4 sm:$0xff]  }
  0x68   :  { %1606 = vmatprep.subr.bf16.mxu0 %v4415_v43  ;;  %1778 = vmatprep.subr.bf16.mxu1 %v4418_v44  ;;  %v4506_v43 = vld [vmem:[%s6331_s1 + $0x520] ss:$16 sps:$4 sm:$0xff]   ;;  %v4509_v44 = vld [vmem:[%s6331_s1 + $0x528] ss:$16 sps:$4 sm:$0xff]  }
  0x6b   :  { %1607 = vmatpush1.bf16.msra.mxu0 %v4413_v45  ;;  %1779 = vmatpush1.bf16.msra.mxu1 %v4416_v46  ;;  %v4514_v45 = vld [vmem:[%s6331_s1 + $0x544] ss:$16 sps:$4 sm:$0xff]   ;;  %v4517_v46 = vld [vmem:[%s6331_s1 + $0x54c] ss:$16 sps:$4 sm:$0xff]  }
  0x6c   :  { %1608 = vmatprep.subr.bf16.mxu0 %v4421_v47  ;;  %1780 = vmatprep.subr.bf16.mxu1 %v4424_v48  ;;  %v4512_v47 = vld [vmem:[%s6331_s1 + $0x540] ss:$16 sps:$4 sm:$0xff]   ;;  %v4515_v48 = vld [vmem:[%s6331_s1 + $0x548] ss:$16 sps:$4 sm:$0xff]  }
  0x6f   :  { %1609 = vmatpush1.bf16.msra.mxu0 %v4419_v49  ;;  %1781 = vmatpush1.bf16.msra.mxu1 %v4422_v50  ;;  %v4520_v49 = vld [vmem:[%s6331_s1 + $0x564] ss:$16 sps:$4 sm:$0xff]   ;;  %v4523_v50 = vld [vmem:[%s6331_s1 + $0x56c] ss:$16 sps:$4 sm:$0xff]  }
  0x70   :  { %1610 = vmatprep.subr.bf16.mxu0 %v4427_v51  ;;  %1782 = vmatprep.subr.bf16.mxu1 %v4430_v52  ;;  %v4518_v51 = vld [vmem:[%s6331_s1 + $0x560] ss:$16 sps:$4 sm:$0xff]   ;;  %v4521_v52 = vld [vmem:[%s6331_s1 + $0x568] ss:$16 sps:$4 sm:$0xff]  }
  0x73   :  { %1611 = vmatpush1.bf16.msra.mxu0 %v4425_v53  ;;  %1783 = vmatpush1.bf16.msra.mxu1 %v4428_v54  ;;  %v4526_v53 = vld [vmem:[%s6331_s1 + $0x584] ss:$16 sps:$4 sm:$0xff]   ;;  %v4529_v54 = vld [vmem:[%s6331_s1 + $0x58c] ss:$16 sps:$4 sm:$0xff]  }
  0x74   :  { %1612 = vmatprep.subr.bf16.mxu0 %v4433_v55  ;;  %1784 = vmatprep.subr.bf16.mxu1 %v4436_v56  ;;  %v4524_v55 = vld [vmem:[%s6331_s1 + $0x580] ss:$16 sps:$4 sm:$0xff]   ;;  %v4527_v56 = vld [vmem:[%s6331_s1 + $0x588] ss:$16 sps:$4 sm:$0xff]  }
  0x77   :  { %1613 = vmatpush1.bf16.msra.mxu0 %v4431_v57  ;;  %1785 = vmatpush1.bf16.msra.mxu1 %v4434_v58  ;;  %v4532_v57 = vld [vmem:[%s6331_s1 + $0x5a4] ss:$16 sps:$4 sm:$0xff]   ;;  %v4535_v58 = vld [vmem:[%s6331_s1 + $0x5ac] ss:$16 sps:$4 sm:$0xff]  }
  0x78   :  { %1614 = vmatprep.subr.bf16.mxu0 %v4439_v59  ;;  %1786 = vmatprep.subr.bf16.mxu1 %v4442_v60  ;;  %v4530_v59 = vld [vmem:[%s6331_s1 + $0x5a0] ss:$16 sps:$4 sm:$0xff]   ;;  %v4533_v60 = vld [vmem:[%s6331_s1 + $0x5a8] ss:$16 sps:$4 sm:$0xff]  }
  0x7b   :  { %1615 = vmatpush1.bf16.msra.mxu0 %v4437_v61  ;;  %1787 = vmatpush1.bf16.msra.mxu1 %v4440_v62  ;;  %v4538_v61 = vld [vmem:[%s6331_s1 + $0x5c4] ss:$16 sps:$4 sm:$0xff]   ;;  %v4541_v62 = vld [vmem:[%s6331_s1 + $0x5cc] ss:$16 sps:$4 sm:$0xff]  }
  0x7c   :  { %1616 = vmatprep.subr.bf16.mxu0 %v4445_v63  ;;  %1788 = vmatprep.subr.bf16.mxu1 %v4448_v0  ;;  %v4536_v63 = vld [vmem:[%s6331_s1 + $0x5c0] ss:$16 sps:$4 sm:$0xff]   ;;  %v4539_v0 = vld [vmem:[%s6331_s1 + $0x5c8] ss:$16 sps:$4 sm:$0xff]  }
  0x7f   :  { %1617 = vmatpush1.bf16.msra.mxu0 %v4443_v1  ;;  %1789 = vmatpush1.bf16.msra.mxu1 %v4446_v2  ;;  %v4544_v1 = vld [vmem:[%s6331_s1 + $0x5e4] ss:$16 sps:$4 sm:$0xff]   ;;  %v4547_v2 = vld [vmem:[%s6331_s1 + $0x5ec] ss:$16 sps:$4 sm:$0xff]  }
  0x80   :  { %1629 = vmatprep.subr.bf16.mxu0 %v4454_v3  ;;  %1801 = vmatprep.subr.bf16.mxu1 %v4457_v4  ;;  %v4542_v3 = vld [vmem:[%s6331_s1 + $0x5e0] ss:$16 sps:$4 sm:$0xff]   ;;  %v4545_v4 = vld [vmem:[%s6331_s1 + $0x5e8] ss:$16 sps:$4 sm:$0xff]  }
  0x82   :  { %1619 = vmatmul.mubr.bf16.vlgmr.msra.gmra.mrb[0].mxu0 %v4449_v5  ;;  %1791 = vmatmul.mubr.bf16.vlgmr.msra.gmra.mrb[0].mxu1 %v4449_v5  ;;  %v4553_v5 = vld [vmem:[%s6331_s1 + $0x604] ss:$16 sps:$4 sm:$0xff]  }
  0x83   :  { %1630 = vmatpush1.bf16.msra.mxu0 %v4452_v6  ;;  %1802 = vmatpush1.bf16.msra.mxu1 %v4455_v7  ;;  %v4556_v6 = vld [vmem:[%s6331_s1 + $0x60c] ss:$16 sps:$4 sm:$0xff]  }
  0x84   :  { %1631 = vmatprep.subr.bf16.mxu0 %v4460_v8  ;;  %1803 = vmatprep.subr.bf16.mxu1 %v4463_v9  ;;  %v4548_v7 = vld [vmem:[%s6332_s0 + $0x10] ss:$28 sps:$4 sm:$0xff]   ;;  %v4554_v9 = vld [vmem:[%s6331_s1 + $0x608] ss:$16 sps:$4 sm:$0xff]  }
  0x85   :  { %1661 = vmatprep.mubr.bf16.mxu0 %v4550_v12  ;;  %1833 = vmatprep.mubr.bf16.mxu1 %v4550_v12  ;;  %v4551_v8 = vld [vmem:[%s6331_s1 + $0x600] ss:$16 sps:$4 sm:$0xff]   ;;  %v4557_v12 = vld [vmem:[%s6332_s0 + $0x18] ss:$28 sps:$4 sm:$0xff]  }
  0x87   :  { %1632 = vmatpush1.bf16.msra.mxu0 %v4458_v10  ;;  %1804 = vmatpush1.bf16.msra.mxu1 %v4461_v11  ;;  %v4559_v10 = vld [vmem:[%s6333_s3 + $0x40] sm:$0xff]   ;;  %v4918_v11 = vmov 0  }
  0x88   :  { %1633 = vmatprep.subr.bf16.mxu0 %v4466_v13  ;;  %1805 = vmatprep.subr.bf16.mxu1 %v4469_v14  ;;  %v4558_v13 = vld [vmem:[%s6333_s3 + $0x80] sm:$0xff]  }
  0x89   :  { %v4560_v14 = vld [vmem:[%s6333_s3] sm:$0xff]  }
  0x8b   :  { %1634 = vmatpush1.bf16.msra.mxu0 %v4464_v15  ;;  %1806 = vmatpush1.bf16.msra.mxu1 %v4467_v16  ;;  %v4562_v15 = vld [vmem:[%s6333_s3 + $0x48] sm:$0xff]  }
  0x8c   :  { %1635 = vmatprep.subr.bf16.mxu0 %v4472_v17  ;;  %1807 = vmatprep.subr.bf16.mxu1 %v4475_v18  ;;  %v4561_v16 = vld [vmem:[%s6333_s3 + $0x88] sm:$0xff]   ;;  %v4565_v18 = vld [vmem:[%s6333_s3 + $0x50] sm:$0xff]  }
  0x8d   :  { %v4563_v17 = vld [vmem:[%s6333_s3 + $0x8] sm:$0xff]  }
  0x8f   :  { %1636 = vmatpush1.bf16.msra.mxu0 %v4470_v19  ;;  %1808 = vmatpush1.bf16.msra.mxu1 %v4473_v20  ;;  %v4564_v19 = vld [vmem:[%s6333_s3 + $0x90] sm:$0xff]  }
  0x90   :  { %1637 = vmatprep.subr.bf16.mxu0 %v4478_v21  ;;  %1809 = vmatprep.subr.bf16.mxu1 %v4481_v22  ;;  %v4566_v20 = vld [vmem:[%s6333_s3 + $0x10] sm:$0xff]   ;;  %v4568_v21 = vld [vmem:[%s6333_s3 + $0x58] sm:$0xff]  }
  0x91   :  { %v4567_v22 = vld [vmem:[%s6333_s3 + $0x98] sm:$0xff]  }
  0x93   :  { %1638 = vmatpush1.bf16.msra.mxu0 %v4476_v23  ;;  %1810 = vmatpush1.bf16.msra.mxu1 %v4479_v24  ;;  %v4569_v23 = vld [vmem:[%s6333_s3 + $0x18] sm:$0xff]   ;;  %v4571_v24 = vld [vmem:[%s6333_s3 + $0x60] sm:$0xff]  }
  0x94   :  { %1639 = vmatprep.subr.bf16.mxu0 %v4484_v25  ;;  %1811 = vmatprep.subr.bf16.mxu1 %v4487_v26  ;;  %v4570_v25 = vld [vmem:[%s6333_s3 + $0xa0] sm:$0xff]  }
  0x95   :  { %v4572_v26 = vld [vmem:[%s6333_s3 + $0x20] sm:$0xff]  }
  0x97   :  { %1640 = vmatpush1.bf16.msra.mxu0 %v4482_v27  ;;  %1812 = vmatpush1.bf16.msra.mxu1 %v4485_v28  ;;  %v4574_v27 = vld [vmem:[%s6333_s3 + $0x68] sm:$0xff]  }
  0x98   :  { %1641 = vmatprep.subr.bf16.mxu0 %v4490_v29  ;;  %1813 = vmatprep.subr.bf16.mxu1 %v4493_v30  ;;  %v4573_v28 = vld [vmem:[%s6333_s3 + $0xa8] sm:$0xff]   ;;  %v4576_v30 = vld [vmem:[%s6333_s3 + $0xb0] sm:$0xff]  }
  0x99   :  { %v4575_v29 = vld [vmem:[%s6333_s3 + $0x28] sm:$0xff]  }
  0x9b   :  { %1642 = vmatpush1.bf16.msra.mxu0 %v4488_v31  ;;  %1814 = vmatpush1.bf16.msra.mxu1 %v4491_v32  ;;  %v4577_v31 = vld [vmem:[%s6333_s3 + $0x70] sm:$0xff]  }
  0x9c   :  { %1643 = vmatprep.subr.bf16.mxu0 %v4496_v33  ;;  %1815 = vmatprep.subr.bf16.mxu1 %v4499_v34  ;;  %v4578_v32 = vld [vmem:[%s6333_s3 + $0x30] sm:$0xff]   ;;  %v4579_v33 = vld [vmem:[%s6333_s3 + $0xb8] sm:$0xff]  }
  0x9d   :  { %v4580_v34 = vld [vmem:[%s6333_s3 + $0x78] sm:$0xff]  }
  0x9f   :  { %1644 = vmatpush1.bf16.msra.mxu0 %v4494_v35  ;;  %1816 = vmatpush1.bf16.msra.mxu1 %v4497_v36  ;;  %v4581_v35 = vld [vmem:[%s6333_s3 + $0x38] sm:$0xff]   ;;  %v4582_v36 = vld [vmem:[%s6333_s3 + $0xc0] sm:$0xff]  }
  0xa0   :  { %1645 = vmatprep.subr.bf16.mxu0 %v4502_v37  ;;  %1817 = vmatprep.subr.bf16.mxu1 %v4505_v38  ;;  %v4585_v37 = vld [vmem:[%s6334_s4 + $0x4] ss:$16 sps:$4 sm:$0xff]   ;;  %v4588_v38 = vld [vmem:[%s6334_s4 + $0xc] ss:$16 sps:$4 sm:$0xff]  }
  0xa3   :  { %1646 = vmatpush1.bf16.msra.mxu0 %v4500_v39  ;;  %1818 = vmatpush1.bf16.msra.mxu1 %v4503_v40  ;;  %v504_v39 = vlaneseq }
  0xa4   :  { %1647 = vmatprep.subr.bf16.mxu0 %v4508_v41  ;;  %1819 = vmatprep.subr.bf16.mxu1 %v4511_v42 }
  0xa5   :  { %v5672_v40 = vshrl.u32 %v504_v39, 7  ;;  %v4619_v39 = vld [vmem:[%s6334_s4 + $0xc0] ss:$16 sps:$4 sm:$0xff]  }
  0xa7   :  { %1648 = vmatpush1.bf16.msra.mxu0 %v4506_v43  ;;  %1820 = vmatpush1.bf16.msra.mxu1 %v4509_v44  ;;  %v506_v41 = vsub.s32 0, %v5672_v40  ;;  %v514_v42 = vsub.s32 2, %v5672_v40  ;;  %v229_v43 = vld [vmem:[%s6335_s2] sm:$0xf]  ;;  %v510_v44 = vsub.s32 1, %v5672_v40 }
  0xa8   :  { %1649 = vmatprep.subr.bf16.mxu0 %v4514_v45  ;;  %1821 = vmatprep.subr.bf16.mxu1 %v4517_v46  ;;  %v518_v45 = vsub.s32 3, %v5672_v40 }
  0xa9   :  { %v507_v46 = vrot.slane %v229_v43, %v506_v41 }
  0xab   :  { %1650 = vmatpush1.bf16.msra.mxu0 %v4512_v47  ;;  %1822 = vmatpush1.bf16.msra.mxu1 %v4515_v48  ;;  %v515_v47 = vrot.slane %v229_v43, %v514_v42  ;;  %v511_v48 = vrot.slane %v229_v43, %v510_v44 }
  0xac   :  { %1651 = vmatprep.subr.bf16.mxu0 %v4520_v49  ;;  %1823 = vmatprep.subr.bf16.mxu1 %v4523_v50  ;;  %v519_v49 = vrot.slane %v229_v43, %v518_v45  ;;  %v4622_v43 = vld [vmem:[%s6334_s4 + $0xc8] ss:$16 sps:$4 sm:$0xff]  }
  0xaf   :  { %1652 = vmatpush1.bf16.msra.mxu0 %v4518_v51  ;;  %1824 = vmatpush1.bf16.msra.mxu1 %v4521_v52 }
  0xb0   :  { %1653 = vmatprep.subr.bf16.mxu0 %v4526_v53  ;;  %1825 = vmatprep.subr.bf16.mxu1 %v4529_v54 }
  0xb3   :  { %1654 = vmatpush1.bf16.msra.mxu0 %v4524_v55  ;;  %1826 = vmatpush1.bf16.msra.mxu1 %v4527_v56 }
  0xb4   :  { %1655 = vmatprep.subr.bf16.mxu0 %v4532_v57  ;;  %1827 = vmatprep.subr.bf16.mxu1 %v4535_v58 }
  0xb7   :  { %1656 = vmatpush1.bf16.msra.mxu0 %v4530_v59  ;;  %1828 = vmatpush1.bf16.msra.mxu1 %v4533_v60 }
  0xb8   :  { %1657 = vmatprep.subr.bf16.mxu0 %v4538_v61  ;;  %1829 = vmatprep.subr.bf16.mxu1 %v4541_v62 }
  0xbb   :  { %1658 = vmatpush1.bf16.msra.mxu0 %v4536_v63  ;;  %1830 = vmatpush1.bf16.msra.mxu1 %v4539_v0 }
  0xbc   :  { %1659 = vmatprep.subr.bf16.mxu0 %v4544_v1  ;;  %1831 = vmatprep.subr.bf16.mxu1 %v4547_v2 }
  0xbf   :  { %1660 = vmatpush1.bf16.msra.mxu0 %v4542_v3  ;;  %1832 = vmatpush1.bf16.msra.mxu1 %v4545_v4 }
  0xc0   :  { %1672 = vmatprep.subr.bf16.mxu0 %v4553_v5  ;;  %1844 = vmatprep.subr.bf16.mxu1 %v4556_v6 }
  0xc2   :  { %1662 = vmatmul.mubr.bf16.vlgmr.msra.gmra.mrb[0].mxu0 %v4548_v7  ;;  %1834 = vmatmul.mubr.bf16.vlgmr.msra.gmra.mrb[0].mxu1 %v4548_v7 }
  0xc3   :  { %1673 = vmatpush1.bf16.msra.mxu0 %v4551_v8  ;;  %1845 = vmatpush1.bf16.msra.mxu1 %v4554_v9 }
  0xc4   :  { %1704 = vmatprep.mubr.bf16.mxu0 %v4918_v11  ;;  %1876 = vmatprep.mubr.bf16.mxu1 %v4918_v11 }
  0xc5   :  { %2093 = vmatprep.subr.bf16.mxu1 %v4918_v11  ;;  %4161 = vmatprep.subr.bf16.mxu0 %v4559_v10 }
  0xce   :  { %3921 = vmatmul.mubr.msk.bf16.vlgmr.msra.gmra.mrb[0].mxu0 %vm1539_vm0, %v4557_v12  ;;  %3922 = vmatmul.mubr.msk.bf16.vlgmr.msra.gmra.mrb[0].mxu1 %vm1539_vm0, %v4557_v12 }
  0xcf   :  { %2094 = vmatpush1.bf16.msra.mxu1 %v4558_v13  ;;  %4162 = vmatpush3.bf16.msra.mxu0 %v4560_v14 }
  0xd0   :  { %2095 = vmatprep.subr.bf16.mxu1 %v4918_v11  ;;  %4163 = vmatprep.subr.bf16.mxu0 %v4562_v15  ;;  %v4583_v15 = vld [vmem:[%s6334_s4] ss:$16 sps:$4 sm:$0xff]  }
  0xd3   :  { %2096 = vmatpush1.bf16.msra.mxu1 %v4561_v16  ;;  %4164 = vmatpush3.bf16.msra.mxu0 %v4563_v17  ;;  %v4586_v16 = vld [vmem:[%s6334_s4 + $0x8] ss:$16 sps:$4 sm:$0xff]   ;;  %v4591_v17 = vld [vmem:[%s6334_s4 + $0x24] ss:$16 sps:$4 sm:$0xff]  }
  0xd4   :  { %2097 = vmatprep.subr.bf16.mxu1 %v4918_v11  ;;  %4165 = vmatprep.subr.bf16.mxu0 %v4565_v18  ;;  %v4594_v18 = vld [vmem:[%s6334_s4 + $0x2c] ss:$16 sps:$4 sm:$0xff]  }
  0xd7   :  { %2098 = vmatpush1.bf16.msra.mxu1 %v4564_v19  ;;  %4166 = vmatpush3.bf16.msra.mxu0 %v4566_v20  ;;  %v4589_v19 = vld [vmem:[%s6334_s4 + $0x20] ss:$16 sps:$4 sm:$0xff]   ;;  %v4592_v20 = vld [vmem:[%s6334_s4 + $0x28] ss:$16 sps:$4 sm:$0xff]  }
  0xd8   :  { %2099 = vmatprep.subr.bf16.mxu1 %v4918_v11  ;;  %4167 = vmatprep.subr.bf16.mxu0 %v4568_v21  ;;  %v4597_v21 = vld [vmem:[%s6334_s4 + $0x44] ss:$16 sps:$4 sm:$0xff]  }
  0xdb   :  { %2100 = vmatpush1.bf16.msra.mxu1 %v4567_v22  ;;  %4168 = vmatpush3.bf16.msra.mxu0 %v4569_v23  ;;  %v4600_v22 = vld [vmem:[%s6334_s4 + $0x4c] ss:$16 sps:$4 sm:$0xff]   ;;  %v4595_v23 = vld [vmem:[%s6334_s4 + $0x40] ss:$16 sps:$4 sm:$0xff]  }
  0xdc   :  { %2101 = vmatprep.subr.bf16.mxu1 %v4918_v11  ;;  %4169 = vmatprep.subr.bf16.mxu0 %v4571_v24  ;;  %v4598_v24 = vld [vmem:[%s6334_s4 + $0x48] ss:$16 sps:$4 sm:$0xff]  }
  0xdf   :  { %2102 = vmatpush1.bf16.msra.mxu1 %v4570_v25  ;;  %4170 = vmatpush3.bf16.msra.mxu0 %v4572_v26  ;;  %v4603_v25 = vld [vmem:[%s6334_s4 + $0x64] ss:$16 sps:$4 sm:$0xff]   ;;  %v4606_v26 = vld [vmem:[%s6334_s4 + $0x6c] ss:$16 sps:$4 sm:$0xff]  }
  0xe0   :  { %2103 = vmatprep.subr.bf16.mxu1 %v4918_v11  ;;  %4171 = vmatprep.subr.bf16.mxu0 %v4574_v27  ;;  %v4601_v27 = vld [vmem:[%s6334_s4 + $0x60] ss:$16 sps:$4 sm:$0xff]  }
  0xe3   :  { %2104 = vmatpush1.bf16.msra.mxu1 %v4573_v28  ;;  %4172 = vmatpush3.bf16.msra.mxu0 %v4575_v29  ;;  %v4604_v28 = vld [vmem:[%s6334_s4 + $0x68] ss:$16 sps:$4 sm:$0xff]   ;;  %v4609_v29 = vld [vmem:[%s6334_s4 + $0x84] ss:$16 sps:$4 sm:$0xff]  }
  0xe4   :  { %2105 = vmatprep.subr.bf16.mxu1 %v4918_v11  ;;  %4173 = vmatprep.subr.bf16.mxu0 %v4577_v31  ;;  %v4607_v31 = vld [vmem:[%s6334_s4 + $0x80] ss:$16 sps:$4 sm:$0xff]  }
  0xe7   :  { %2106 = vmatpush1.bf16.msra.mxu1 %v4576_v30  ;;  %4174 = vmatpush3.bf16.msra.mxu0 %v4578_v32  ;;  %v4612_v30 = vld [vmem:[%s6334_s4 + $0x8c] ss:$16 sps:$4 sm:$0xff]   ;;  %v4610_v32 = vld [vmem:[%s6334_s4 + $0x88] ss:$16 sps:$4 sm:$0xff]  }
  0xe8   :  { %2107 = vmatprep.subr.bf16.mxu1 %v4918_v11  ;;  %4175 = vmatprep.subr.bf16.mxu0 %v4580_v34  ;;  %v4618_v34 = vld [vmem:[%s6334_s4 + $0xac] ss:$16 sps:$4 sm:$0xff]  }
  0xeb   :  { %2108 = vmatpush1.bf16.msra.mxu1 %v4579_v33  ;;  %4176 = vmatpush3.bf16.msra.mxu0 %v4581_v35  ;;  %v4615_v33 = vld [vmem:[%s6334_s4 + $0xa4] ss:$16 sps:$4 sm:$0xff]   ;;  %v4613_v35 = vld [vmem:[%s6334_s4 + $0xa0] ss:$16 sps:$4 sm:$0xff]  }
  0xec   :  { %2109 = vmatprep.subr.bf16.mxu1 %v4918_v11  ;;  %2297 = vmatprep.subr.bf16.mxu0 %v4585_v37  ;;  %v4621_v37 = vld [vmem:[%s6334_s4 + $0xc4] ss:$16 sps:$4 sm:$0xff]  }
  0xef   :  { %2110 = vmatpush1.bf16.msra.mxu1 %v4582_v36  ;;  %v4616_v36 = vld [vmem:[%s6334_s4 + $0xa8] ss:$16 sps:$4 sm:$0xff]  }
  0xf0   :  { %2340 = vmatprep.subr.bf16.mxu1 %v4588_v38  ;;  %v4624_v38 = vld [vmem:[%s6334_s4 + $0xcc] ss:$16 sps:$4 sm:$0xff]  }
 0x1a1   :  { %v1706_v50 = vpop.f32.mrb[0].mxu0  ;;  %v1878_v51 = vpop.f32.mrb[0].mxu1 }
 0x1a2   :  { %v4205_v52 = vadd.f32 %v1706_v50, %v507_v46  ;;  %v4209_v53 = vadd.f32 %v1878_v51, %v515_v47  ;;  %v1708_v54 = vpop.f32.mrb[1].mxu0  ;;  %v1880_v55 = vpop.f32.mrb[1].mxu1  ;;  %v4633_v50 = vld [vmem:[%s6336_s5 + $0x4] ss:$16 sps:$4 sm:$0xff]   ;;  %v4636_v51 = vld [vmem:[%s6336_s5 + $0xc] ss:$16 sps:$4 sm:$0xff]  }
 0x1a3   :  { %v4206_v56 = vadd.f32 %v1708_v54, %v511_v48  ;;  %v4210_v57 = vadd.f32 %v1880_v55, %v519_v49  ;;  %v1710_v58 = vpop.f32.mrb[2].mxu0  ;;  %v1882_v59 = vpop.f32.mrb[2].mxu1 }
 0x1a4   :  { %v4207_v60 = vadd.f32 %v1710_v58, %v507_v46  ;;  %v4211_v61 = vadd.f32 %v1882_v59, %v515_v47  ;;  %v1712_v62 = vpop.f32.mrb[3].mxu0  ;;  %v1884_v63 = vpop.f32.mrb[3].mxu1  ;;  %v1887_v2 = vmax.f32 %v4205_v52, 0.0  ;;  %v1889_v3 = vmax.f32 %v4209_v53, 0.0  ;;  %v4627_v46 = vld [vmem:[%s6334_s4 + $0xe4] ss:$16 sps:$4 sm:$0xff]  }
 0x1a5   :  { %v4208_v0 = vadd.f32 %v1712_v62, %v511_v48  ;;  %v4212_v1 = vadd.f32 %v1884_v63, %v519_v49  ;;  %v1888_v6 = vmax.f32 %v4206_v56, 0.0  ;;  %v1890_v7 = vmax.f32 %v4210_v57, 0.0  ;;  %v4630_v47 = vld [vmem:[%s6334_s4 + $0xec] ss:$16 sps:$4 sm:$0xff]   ;;  %v4625_v48 = vld [vmem:[%s6334_s4 + $0xe0] ss:$16 sps:$4 sm:$0xff]  }
 0x1a6   :  { %v1891_v4 = vmax.f32 %v4207_v60, 0.0  ;;  %v1893_v5 = vmax.f32 %v4211_v61, 0.0  ;;  %v4628_v49 = vld [vmem:[%s6334_s4 + $0xe8] ss:$16 sps:$4 sm:$0xff]  }
 0x1a7   :  { %v1892_v8 = vmax.f32 %v4208_v0, 0.0  ;;  %v1894_v9 = vmax.f32 %v4212_v1, 0.0 }
 0x1a8   :  { %v5689_v10 = vpack.c.bf16 %v1891_v4, %v1887_v2  ;;  %v5691_v12 = vpack.c.bf16 %v1893_v5, %v1889_v3  ;;  %v4631_v2 = vld [vmem:[%s6336_s5] ss:$16 sps:$4 sm:$0xff]   ;;  %v4634_v3 = vld [vmem:[%s6336_s5 + $0x8] ss:$16 sps:$4 sm:$0xff]   ;;  %v4639_v5 = vld [vmem:[%s6336_s5 + $0x24] ss:$16 sps:$4 sm:$0xff]  }
 0x1a9   :  { %v5693_v13 = vpack.c.bf16 %v1892_v8, %v1888_v6  ;;  %v5695_v14 = vpack.c.bf16 %v1894_v9, %v1890_v7  ;;  %v4642_v6 = vld [vmem:[%s6336_s5 + $0x2c] ss:$16 sps:$4 sm:$0xff]   ;;  %v4637_v7 = vld [vmem:[%s6336_s5 + $0x20] ss:$16 sps:$4 sm:$0xff]   ;;  %v4640_v8 = vld [vmem:[%s6336_s5 + $0x28] ss:$16 sps:$4 sm:$0xff]  }
 0x1aa   :  { %v4645_v9 = vld [vmem:[%s6336_s5 + $0x44] ss:$16 sps:$4 sm:$0xff]  }
 0x1ab   :  { %2084 = vmatprep.mubr.bf16.mxu0 %v5693_v13  ;;  %3948 = vmatprep.mubr.msk.bf16.mxu1 %vm1539_vm0, %v5695_v14 }
 0x1ac   :  { %2085 = vmatmul.mubr.bf16.vlgmr.msra.gmra.mrb[4].mxu0 %v5689_v10  ;;  %2126 = vmatmul.mubr.bf16.vlgmr.msra.gmra.mrb[4].mxu1 %v5691_v12 }
 0x1ad   :  { %2298 = vmatpush1.bf16.msra.mxu0 %v4583_v15  ;;  %2341 = vmatpush1.bf16.msra.mxu1 %v4586_v16  ;;  %v4648_v15 = vld [vmem:[%s6336_s5 + $0x4c] ss:$16 sps:$4 sm:$0xff]   ;;  %v4643_v16 = vld [vmem:[%s6336_s5 + $0x40] ss:$16 sps:$4 sm:$0xff]  }
 0x1ae   :  { %2299 = vmatprep.subr.bf16.mxu0 %v4591_v17  ;;  %2342 = vmatprep.subr.bf16.mxu1 %v4594_v18  ;;  %v4646_v17 = vld [vmem:[%s6336_s5 + $0x48] ss:$16 sps:$4 sm:$0xff]   ;;  %v4651_v18 = vld [vmem:[%s6336_s5 + $0x64] ss:$16 sps:$4 sm:$0xff]  }
 0x1af   :  { %2329 = vmatprep.mubr.bf16.mxu0 %v4918_v11  ;;  %2372 = vmatprep.mubr.bf16.mxu1 %v4918_v11 }
 0x1b1   :  { %2300 = vmatpush1.bf16.msra.mxu0 %v4589_v19  ;;  %2343 = vmatpush1.bf16.msra.mxu1 %v4592_v20  ;;  %v4654_v19 = vld [vmem:[%s6336_s5 + $0x6c] ss:$16 sps:$4 sm:$0xff]   ;;  %v4649_v20 = vld [vmem:[%s6336_s5 + $0x60] ss:$16 sps:$4 sm:$0xff]  }
 0x1b2   :  { %2301 = vmatprep.subr.bf16.mxu0 %v4597_v21  ;;  %2344 = vmatprep.subr.bf16.mxu1 %v4600_v22  ;;  %v4652_v21 = vld [vmem:[%s6336_s5 + $0x68] ss:$16 sps:$4 sm:$0xff]   ;;  %v4657_v22 = vld [vmem:[%s6336_s5 + $0x84] ss:$16 sps:$4 sm:$0xff]  }
 0x1b5   :  { %2302 = vmatpush1.bf16.msra.mxu0 %v4595_v23  ;;  %2345 = vmatpush1.bf16.msra.mxu1 %v4598_v24  ;;  %v4660_v23 = vld [vmem:[%s6336_s5 + $0x8c] ss:$16 sps:$4 sm:$0xff]   ;;  %v4655_v24 = vld [vmem:[%s6336_s5 + $0x80] ss:$16 sps:$4 sm:$0xff]  }
 0x1b6   :  { %2303 = vmatprep.subr.bf16.mxu0 %v4603_v25  ;;  %2346 = vmatprep.subr.bf16.mxu1 %v4606_v26  ;;  %v4658_v25 = vld [vmem:[%s6336_s5 + $0x88] ss:$16 sps:$4 sm:$0xff]   ;;  %v4663_v26 = vld [vmem:[%s6336_s5 + $0xa4] ss:$16 sps:$4 sm:$0xff]  }
 0x1b9   :  { %2304 = vmatpush1.bf16.msra.mxu0 %v4601_v27  ;;  %2347 = vmatpush1.bf16.msra.mxu1 %v4604_v28  ;;  %v4666_v27 = vld [vmem:[%s6336_s5 + $0xac] ss:$16 sps:$4 sm:$0xff]   ;;  %v4661_v28 = vld [vmem:[%s6336_s5 + $0xa0] ss:$16 sps:$4 sm:$0xff]  }
 0x1ba   :  { %2305 = vmatprep.subr.bf16.mxu0 %v4609_v29  ;;  %2348 = vmatprep.subr.bf16.mxu1 %v4612_v30  ;;  %v4664_v29 = vld [vmem:[%s6336_s5 + $0xa8] ss:$16 sps:$4 sm:$0xff]   ;;  %v4669_v30 = vld [vmem:[%s6336_s5 + $0xc4] ss:$16 sps:$4 sm:$0xff]  }
 0x1bd   :  { %2306 = vmatpush1.bf16.msra.mxu0 %v4607_v31  ;;  %2349 = vmatpush1.bf16.msra.mxu1 %v4610_v32  ;;  %v4672_v31 = vld [vmem:[%s6336_s5 + $0xcc] ss:$16 sps:$4 sm:$0xff]   ;;  %v4667_v32 = vld [vmem:[%s6336_s5 + $0xc0] ss:$16 sps:$4 sm:$0xff]  }
 0x1be   :  { %2307 = vmatprep.subr.bf16.mxu0 %v4615_v33  ;;  %2350 = vmatprep.subr.bf16.mxu1 %v4618_v34  ;;  %v4670_v33 = vld [vmem:[%s6336_s5 + $0xc8] ss:$16 sps:$4 sm:$0xff]   ;;  %v4675_v34 = vld [vmem:[%s6336_s5 + $0xe4] ss:$16 sps:$4 sm:$0xff]  }
 0x1c1   :  { %2308 = vmatpush1.bf16.msra.mxu0 %v4613_v35  ;;  %2351 = vmatpush1.bf16.msra.mxu1 %v4616_v36  ;;  %v4678_v35 = vld [vmem:[%s6336_s5 + $0xec] ss:$16 sps:$4 sm:$0xff]   ;;  %v4673_v36 = vld [vmem:[%s6336_s5 + $0xe0] ss:$16 sps:$4 sm:$0xff]  }
 0x1c2   :  { %2309 = vmatprep.subr.bf16.mxu0 %v4621_v37  ;;  %2352 = vmatprep.subr.bf16.mxu1 %v4624_v38  ;;  %v4676_v37 = vld [vmem:[%s6336_s5 + $0xe8] ss:$16 sps:$4 sm:$0xff]   ;;  %v4681_v38 = vld [vmem:[%s6336_s5 + $0x104] ss:$16 sps:$4 sm:$0xff]  }
 0x1c5   :  { %2310 = vmatpush1.bf16.msra.mxu0 %v4619_v39  ;;  %2353 = vmatpush1.bf16.msra.mxu1 %v4622_v43  ;;  %v4684_v39 = vld [vmem:[%s6336_s5 + $0x10c] ss:$16 sps:$4 sm:$0xff]   ;;  %v4679_v43 = vld [vmem:[%s6336_s5 + $0x100] ss:$16 sps:$4 sm:$0xff]  }
 0x1c6   :  { %2311 = vmatprep.subr.bf16.mxu0 %v4627_v46  ;;  %2354 = vmatprep.subr.bf16.mxu1 %v4630_v47  ;;  %v4682_v46 = vld [vmem:[%s6336_s5 + $0x108] ss:$16 sps:$4 sm:$0xff]   ;;  %v4687_v47 = vld [vmem:[%s6336_s5 + $0x124] ss:$16 sps:$4 sm:$0xff]  }
 0x1c9   :  { %2312 = vmatpush1.bf16.msra.mxu0 %v4625_v48  ;;  %2355 = vmatpush1.bf16.msra.mxu1 %v4628_v49  ;;  %v4690_v48 = vld [vmem:[%s6336_s5 + $0x12c] ss:$16 sps:$4 sm:$0xff]   ;;  %v4685_v49 = vld [vmem:[%s6336_s5 + $0x120] ss:$16 sps:$4 sm:$0xff]  }
 0x1ca   :  { %2963 = vmatprep.subr.bf16.mxu0 %v4633_v50  ;;  %3049 = vmatprep.subr.bf16.mxu1 %v4636_v51  ;;  %v4688_v50 = vld [vmem:[%s6336_s5 + $0x128] ss:$16 sps:$4 sm:$0xff]   ;;  %v4693_v51 = vld [vmem:[%s6336_s5 + $0x144] ss:$16 sps:$4 sm:$0xff]  }
 0x27f   :  { %v4177_v52 = vpop.f32.mrb[4].mxu0  ;;  %v2127_v53 = vpop.f32.mrb[4].mxu1 }
 0x280   :  { %v4178_v54 = vpop.f32.mrb[5].mxu0  ;;  %v2129_v55 = vpop.f32.mrb[5].mxu1 }
 0x281   :  { %v4179_v56 = vadd.f32 %v4178_v54, %v4177_v52  ;;  %v4180_v57 = vpop.f32.mrb[6].mxu0  ;;  %v2130_v58 = vpop.f32.mrb[6].mxu1  ;;  %v4696_v52 = vld [vmem:[%s6336_s5 + $0x14c] ss:$16 sps:$4 sm:$0xff]   ;;  %v4694_v54 = vld [vmem:[%s6336_s5 + $0x148] ss:$16 sps:$4 sm:$0xff]  }
 0x282   :  { %v4181_v59 = vpop.f32.mrb[7].mxu0  ;;  %v2132_v60 = vpop.f32.mrb[7].mxu1  ;;  %v4699_v55 = vld [vmem:[%s6336_s5 + $0x164] ss:$16 sps:$4 sm:$0xff]  }
 0x283   :  { %v2128_v61 = vadd.f32 %v4179_v56, %v2127_v53  ;;  %v4182_v62 = vadd.f32 %v4181_v59, %v4180_v57  ;;  %v4691_v53 = vld [vmem:[%s6336_s5 + $0x140] ss:$16 sps:$4 sm:$0xff]   ;;  %v4702_v56 = vld [vmem:[%s6336_s5 + $0x16c] ss:$16 sps:$4 sm:$0xff]   ;;  %v4705_v59 = vld [vmem:[%s6336_s5 + $0x184] ss:$16 sps:$4 sm:$0xff]  }
 0x284   :  { %v4697_v57 = vld [vmem:[%s6336_s5 + $0x160] ss:$16 sps:$4 sm:$0xff]   ;;  %v4708_v60 = vld [vmem:[%s6336_s5 + $0x18c] ss:$16 sps:$4 sm:$0xff]  }
 0x285   :  { %v2131_v63 = vadd.f32 %v4182_v62, %v2130_v58  ;;  %v2134_v0 = vmax.f32 %v2128_v61, 0.0  ;;  %v4700_v58 = vld [vmem:[%s6336_s5 + $0x168] ss:$16 sps:$4 sm:$0xff]   ;;  %v4703_v61 = vld [vmem:[%s6336_s5 + $0x180] ss:$16 sps:$4 sm:$0xff]  }
 0x286   :  { %v4706_v62 = vld [vmem:[%s6336_s5 + $0x188] ss:$16 sps:$4 sm:$0xff]  }
 0x287   :  { %v2135_v1 = vmax.f32 %v2131_v63, 0.0  ;;  %v4709_v63 = vld [vmem:[%s6336_s5 + $0x1a0] ss:$16 sps:$4 sm:$0xff]  }
 0x289   :  { %v2136_v4 = vpack.c.bf16 %v2135_v1, %v2134_v0  ;;  %v4711_v0 = vld [vmem:[%s6336_s5 + $0x1a4] ss:$16 sps:$4 sm:$0xff]   ;;  %v4712_v1 = vld [vmem:[%s6336_s5 + $0x1a8] ss:$16 sps:$4 sm:$0xff]  }
 0x28b   :  { %2330 = vmatmul.mubr.bf16.vlgmr.msra.gmra.mrb[8].mxu0 %v2136_v4  ;;  %2373 = vmatmul.mubr.bf16.vlgmr.msra.gmra.mrb[8].mxu1 %v2136_v4  ;;  %v4720_v4 = vld [vmem:[%s6336_s5 + $0x1cc] ss:$16 sps:$4 sm:$0xff]  }
 0x28c   :  { %2964 = vmatpush1.bf16.msra.mxu0 %v4631_v2  ;;  %3050 = vmatpush1.bf16.msra.mxu1 %v4634_v3  ;;  %v4714_v2 = vld [vmem:[%s6336_s5 + $0x1ac] ss:$16 sps:$4 sm:$0xff]   ;;  %v4717_v3 = vld [vmem:[%s6336_s5 + $0x1c4] ss:$16 sps:$4 sm:$0xff]  }
 0x28d   :  { %2965 = vmatprep.subr.bf16.mxu0 %v4639_v5  ;;  %3051 = vmatprep.subr.bf16.mxu1 %v4642_v6  ;;  %v4715_v5 = vld [vmem:[%s6336_s5 + $0x1c0] ss:$16 sps:$4 sm:$0xff]   ;;  %v4718_v6 = vld [vmem:[%s6336_s5 + $0x1c8] ss:$16 sps:$4 sm:$0xff]  }
 0x290   :  { %2966 = vmatpush1.bf16.msra.mxu0 %v4637_v7  ;;  %3052 = vmatpush1.bf16.msra.mxu1 %v4640_v8  ;;  %v4723_v7 = vld [vmem:[%s6336_s5 + $0x1e4] ss:$16 sps:$4 sm:$0xff]   ;;  %v4726_v8 = vld [vmem:[%s6336_s5 + $0x1ec] ss:$16 sps:$4 sm:$0xff]  }
 0x291   :  { %2967 = vmatprep.subr.bf16.mxu0 %v4645_v9  ;;  %3053 = vmatprep.subr.bf16.mxu1 %v4648_v15  ;;  %v4721_v9 = vld [vmem:[%s6336_s5 + $0x1e0] ss:$16 sps:$4 sm:$0xff]   ;;  %v4724_v15 = vld [vmem:[%s6336_s5 + $0x1e8] ss:$16 sps:$4 sm:$0xff]  }
 0x294   :  { %2968 = vmatpush1.bf16.msra.mxu0 %v4643_v16  ;;  %3054 = vmatpush1.bf16.msra.mxu1 %v4646_v17  ;;  %v4729_v16 = vld [vmem:[%s6336_s5 + $0x204] ss:$16 sps:$4 sm:$0xff]   ;;  %v4732_v17 = vld [vmem:[%s6336_s5 + $0x20c] ss:$16 sps:$4 sm:$0xff]  }
 0x295   :  { %2969 = vmatprep.subr.bf16.mxu0 %v4651_v18  ;;  %3055 = vmatprep.subr.bf16.mxu1 %v4654_v19 }
 0x298   :  { %2970 = vmatpush1.bf16.msra.mxu0 %v4649_v20  ;;  %3056 = vmatpush1.bf16.msra.mxu1 %v4652_v21 }
 0x299   :  { %2971 = vmatprep.subr.bf16.mxu0 %v4657_v22  ;;  %3057 = vmatprep.subr.bf16.mxu1 %v4660_v23 }
 0x29c   :  { %2972 = vmatpush1.bf16.msra.mxu0 %v4655_v24  ;;  %3058 = vmatpush1.bf16.msra.mxu1 %v4658_v25 }
 0x29d   :  { %2973 = vmatprep.subr.bf16.mxu0 %v4663_v26  ;;  %3059 = vmatprep.subr.bf16.mxu1 %v4666_v27 }
 0x2a0   :  { %2974 = vmatpush1.bf16.msra.mxu0 %v4661_v28  ;;  %3060 = vmatpush1.bf16.msra.mxu1 %v4664_v29 }
 0x2a1   :  { %2975 = vmatprep.subr.bf16.mxu0 %v4669_v30  ;;  %3061 = vmatprep.subr.bf16.mxu1 %v4672_v31 }
 0x2a4   :  { %2976 = vmatpush1.bf16.msra.mxu0 %v4667_v32  ;;  %3062 = vmatpush1.bf16.msra.mxu1 %v4670_v33 }
 0x2a5   :  { %2977 = vmatprep.subr.bf16.mxu0 %v4675_v34  ;;  %3063 = vmatprep.subr.bf16.mxu1 %v4678_v35 }
 0x2a8   :  { %2978 = vmatpush1.bf16.msra.mxu0 %v4673_v36  ;;  %3064 = vmatpush1.bf16.msra.mxu1 %v4676_v37 }
 0x2a9   :  { %2979 = vmatprep.subr.bf16.mxu0 %v4681_v38  ;;  %3065 = vmatprep.subr.bf16.mxu1 %v4684_v39 }
 0x2ac   :  { %2980 = vmatpush1.bf16.msra.mxu0 %v4679_v43  ;;  %3066 = vmatpush1.bf16.msra.mxu1 %v4682_v46 }
 0x2ad   :  { %2981 = vmatprep.subr.bf16.mxu0 %v4687_v47  ;;  %3067 = vmatprep.subr.bf16.mxu1 %v4690_v48 }
 0x2b0   :  { %2982 = vmatpush1.bf16.msra.mxu0 %v4685_v49  ;;  %3068 = vmatpush1.bf16.msra.mxu1 %v4688_v50 }
 0x2b1   :  { %2983 = vmatprep.subr.bf16.mxu0 %v4693_v51  ;;  %3069 = vmatprep.subr.bf16.mxu1 %v4696_v52 }
 0x2b4   :  { %2984 = vmatpush1.bf16.msra.mxu0 %v4691_v53  ;;  %3070 = vmatpush1.bf16.msra.mxu1 %v4694_v54 }
 0x2b5   :  { %2985 = vmatprep.subr.bf16.mxu0 %v4699_v55  ;;  %3071 = vmatprep.subr.bf16.mxu1 %v4702_v56 }
 0x2b8   :  { %2986 = vmatpush1.bf16.msra.mxu0 %v4697_v57  ;;  %3072 = vmatpush1.bf16.msra.mxu1 %v4700_v58 }
 0x2b9   :  { %2987 = vmatprep.subr.bf16.mxu0 %v4705_v59  ;;  %3073 = vmatprep.subr.bf16.mxu1 %v4708_v60 }
 0x2bc   :  { %2988 = vmatpush1.bf16.msra.mxu0 %v4703_v61  ;;  %3074 = vmatpush1.bf16.msra.mxu1 %v4706_v62 }
 0x2bd   :  { %2989 = vmatprep.subr.bf16.mxu0 %v4711_v0  ;;  %3075 = vmatprep.subr.bf16.mxu1 %v4714_v2 }
 0x2c0   :  { %2990 = vmatpush1.bf16.msra.mxu0 %v4709_v63  ;;  %3076 = vmatpush1.bf16.msra.mxu1 %v4712_v1 }
 0x2c1   :  { %2991 = vmatprep.subr.bf16.mxu0 %v4717_v3  ;;  %3077 = vmatprep.subr.bf16.mxu1 %v4720_v4  ;;  %v4727_v4 = vld [vmem:[%s6336_s5 + $0x200] ss:$16 sps:$4 sm:$0xff]  }
 0x2c4   :  { %2992 = vmatpush1.bf16.msra.mxu0 %v4715_v5  ;;  %3078 = vmatpush1.bf16.msra.mxu1 %v4718_v6  ;;  %v4730_v5 = vld [vmem:[%s6336_s5 + $0x208] ss:$16 sps:$4 sm:$0xff]  }
 0x2c5   :  { %2993 = vmatprep.subr.bf16.mxu0 %v4723_v7  ;;  %3079 = vmatprep.subr.bf16.mxu1 %v4726_v8  ;;  %v4735_v7 = vld [vmem:[%s6336_s5 + $0x224] ss:$16 sps:$4 sm:$0xff]  }
 0x2c8   :  { %2994 = vmatpush1.bf16.msra.mxu0 %v4721_v9  ;;  %3080 = vmatpush1.bf16.msra.mxu1 %v4724_v15  ;;  %v4736_v9 = vld [vmem:[%s6336_s5 + $0x228] ss:$16 sps:$4 sm:$0xff]   ;;  %v4741_v15 = vld [vmem:[%s6336_s5 + $0x244] ss:$16 sps:$4 sm:$0xff]  }
 0x2c9   :  { %3006 = vmatprep.subr.bf16.mxu0 %v4729_v16  ;;  %3092 = vmatprep.subr.bf16.mxu1 %v4732_v17  ;;  %v4739_v16 = vld [vmem:[%s6336_s5 + $0x240] ss:$16 sps:$4 sm:$0xff]   ;;  %v4742_v17 = vld [vmem:[%s6336_s5 + $0x248] ss:$16 sps:$4 sm:$0xff]  }
 0x35e   :  { %v2331_v18 = vpop.f32.mrb[8].mxu0  ;;  %v2374_v19 = vpop.f32.mrb[8].mxu1 }
 0x35f   :  { %v3981_v20 = vmul.f32 -1.442695, %v2331_v18  ;;  %v3983_v21 = vmul.f32 -1.442695, %v2374_v19  ;;  %v2333_v22 = vpop.f32.mrb[9].mxu0  ;;  %v2376_v23 = vpop.f32.mrb[9].mxu1 }
 0x360   :  { %v3982_v24 = vmul.f32 -1.442695, %v2333_v22  ;;  %v3984_v25 = vmul.f32 -1.442695, %v2376_v23  ;;  %v2335_v26 = vpop.f32.mrb[10].mxu0  ;;  %v2378_v27 = vpop.f32.mrb[10].mxu1 }
 0x361   :  { %4854 = vpow2.f32 %v3981_v20  ;;  %v3985_v28 = vmul.f32 -1.442695, %v2335_v26  ;;  %v2337_v29 = vpop.f32.mrb[11].mxu0  ;;  %v2380_v30 = vpop.f32.mrb[11].mxu1  ;;  %v3987_v31 = vmul.f32 -1.442695, %v2378_v27 }
 0x362   :  { %4856 = vpow2.f32 %v3983_v21  ;;  %v3986_v32 = vmul.f32 -1.442695, %v2337_v29  ;;  %v3988_v33 = vmul.f32 -1.442695, %v2380_v30  ;;  %v4747_v18 = vld [vmem:[%s6336_s5 + $0x264] ss:$16 sps:$4 sm:$0xff]  }
 0x363   :  { %4858 = vpow2.f32 %v3982_v24  ;;  %v4750_v19 = vld [vmem:[%s6336_s5 + $0x26c] ss:$16 sps:$4 sm:$0xff]   ;;  %v4745_v20 = vld [vmem:[%s6336_s5 + $0x260] ss:$16 sps:$4 sm:$0xff]   ;;  %v4748_v21 = vld [vmem:[%s6336_s5 + $0x268] ss:$16 sps:$4 sm:$0xff]  }
 0x364   :  { %4860 = vpow2.f32 %v3984_v25  ;;  %v4753_v22 = vld [vmem:[%s6336_s5 + $0x284] ss:$16 sps:$4 sm:$0xff]   ;;  %v4756_v23 = vld [vmem:[%s6336_s5 + $0x28c] ss:$16 sps:$4 sm:$0xff]   ;;  %v4751_v24 = vld [vmem:[%s6336_s5 + $0x280] ss:$16 sps:$4 sm:$0xff]  }
 0x365   :  { %4862 = vpow2.f32 %v3985_v28  ;;  %v4754_v25 = vld [vmem:[%s6336_s5 + $0x288] ss:$16 sps:$4 sm:$0xff]   ;;  %v4759_v26 = vld [vmem:[%s6336_s5 + $0x2a4] ss:$16 sps:$4 sm:$0xff]   ;;  %v4762_v27 = vld [vmem:[%s6336_s5 + $0x2ac] ss:$16 sps:$4 sm:$0xff]  }
 0x366   :  { %4864 = vpow2.f32 %v3987_v31  ;;  %v4757_v28 = vld [vmem:[%s6336_s5 + $0x2a0] ss:$16 sps:$4 sm:$0xff]   ;;  %v4760_v29 = vld [vmem:[%s6336_s5 + $0x2a8] ss:$16 sps:$4 sm:$0xff]   ;;  %v4765_v30 = vld [vmem:[%s6336_s5 + $0x2c4] ss:$16 sps:$4 sm:$0xff]  }
 0x367   :  { %4866 = vpow2.f32 %v3986_v32  ;;  %v4768_v31 = vld [vmem:[%s6336_s5 + $0x2cc] ss:$16 sps:$4 sm:$0xff]   ;;  %v4763_v32 = vld [vmem:[%s6336_s5 + $0x2c0] ss:$16 sps:$4 sm:$0xff]  }
 0x368   :  { %4868 = vpow2.f32 %v3988_v33  ;;  %v4766_v33 = vld [vmem:[%s6336_s5 + $0x2c8] ss:$16 sps:$4 sm:$0xff]  }
 0x36b   :  { %v4855_v34 = vpop.eup %4854 }
 0x36c   :  { %v4857_v35 = vpop.eup %4856  ;;  %v2407_v36 = vadd.f32 1.0, %v4855_v34  ;;  %v4771_v34 = vld [vmem:[%s6336_s5 + $0x2e4] ss:$16 sps:$4 sm:$0xff]  }
 0x36d   :  { %v4859_v37 = vpop.eup %4858  ;;  %v2409_v38 = vadd.f32 1.0, %v4857_v35  ;;  %v4774_v35 = vld [vmem:[%s6336_s5 + $0x2ec] ss:$16 sps:$4 sm:$0xff]  }
 0x36e   :  { %v4861_v39 = vpop.eup %4860  ;;  %4870 = vrcp.f32 %v2407_v36  ;;  %v2408_v43 = vadd.f32 1.0, %v4859_v37  ;;  %v4769_v36 = vld [vmem:[%s6336_s5 + $0x2e0] ss:$16 sps:$4 sm:$0xff]   ;;  %v4772_v37 = vld [vmem:[%s6336_s5 + $0x2e8] ss:$16 sps:$4 sm:$0xff]  }
 0x36f   :  { %v4863_v46 = vpop.eup %4862  ;;  %4872 = vrcp.f32 %v2409_v38  ;;  %v2410_v47 = vadd.f32 1.0, %v4861_v39  ;;  %v4777_v38 = vld [vmem:[%s6336_s5 + $0x304] ss:$16 sps:$4 sm:$0xff]   ;;  %v4780_v39 = vld [vmem:[%s6336_s5 + $0x30c] ss:$16 sps:$4 sm:$0xff]  }
 0x370   :  { %v4865_v48 = vpop.eup %4864  ;;  %4874 = vrcp.f32 %v2408_v43  ;;  %v2411_v49 = vadd.f32 1.0, %v4863_v46  ;;  %v4775_v43 = vld [vmem:[%s6336_s5 + $0x300] ss:$16 sps:$4 sm:$0xff]   ;;  %v4778_v46 = vld [vmem:[%s6336_s5 + $0x308] ss:$16 sps:$4 sm:$0xff]  }
 0x371   :  { %v4867_v50 = vpop.eup %4866  ;;  %4876 = vrcp.f32 %v2410_v47  ;;  %v2413_v51 = vadd.f32 1.0, %v4865_v48  ;;  %v4782_v47 = vld [vmem:[%s6337_s7 + $0x40] sm:$0xff]  }
 0x372   :  { %v4869_v52 = vpop.eup %4868  ;;  %4878 = vrcp.f32 %v2411_v49  ;;  %v2412_v53 = vadd.f32 1.0, %v4867_v50  ;;  %v4781_v48 = vld [vmem:[%s6337_s7 + $0x80] sm:$0xff]  }
 0x373   :  { %4880 = vrcp.f32 %v2413_v51  ;;  %v2414_v54 = vadd.f32 1.0, %v4869_v52  ;;  %v4783_v49 = vld [vmem:[%s6337_s7] sm:$0xff]   ;;  %v4785_v51 = vld [vmem:[%s6337_s7 + $0x48] sm:$0xff]  }
 0x374   :  { %4882 = vrcp.f32 %v2412_v53  ;;  %v4784_v52 = vld [vmem:[%s6337_s7 + $0x88] sm:$0xff]  }
 0x375   :  { %4884 = vrcp.f32 %v2414_v54  ;;  %v4786_v53 = vld [vmem:[%s6337_s7 + $0x8] sm:$0xff]   ;;  %v4787_v54 = vld [vmem:[%s6337_s7 + $0x90] sm:$0xff]  }
 0x378   :  { %v4871_v55 = vpop.eup %4870 }
 0x379   :  { %v5992_v56 = vpop.eup %4872 }
 0x37a   :  { %v4875_v57 = vpop.eup %4874 }
 0x37b   :  { %v4877_v58 = vpop.eup %4876 }
 0x37c   :  { %v4879_v59 = vpop.eup %4878 }
 0x37d   :  { %v5994_v60 = vpop.eup %4880  ;;  %v2431_v61 = vpack.c.bf16 %v4879_v59, %v4871_v55  ;;  %v4789_v55 = vld [vmem:[%s6337_s7 + $0x10] sm:$0xff]   ;;  %v4794_v59 = vld [vmem:[%s6337_s7 + $0x60] sm:$0xff]  }
 0x37e   :  { %v4883_v62 = vpop.eup %4882  ;;  %v2433_v63 = vpack.c.bf16 %v5994_v60, %v5992_v56  ;;  %v4791_v56 = vld [vmem:[%s6337_s7 + $0x58] sm:$0xff]   ;;  %v4793_v60 = vld [vmem:[%s6337_s7 + $0xa0] sm:$0xff]  }
 0x37f   :  { %v4885_v0 = vpop.eup %4884  ;;  %v2432_v1 = vpack.c.bf16 %v4883_v62, %v4875_v57  ;;  %v2435_v6 = vmul.bf16 %v2431_v61, %v5689_v10  ;;  %v4733_v10 = vld [vmem:[%s6336_s5 + $0x220] ss:$16 sps:$4 sm:$0xff]   ;;  %v4790_v57 = vld [vmem:[%s6337_s7 + $0x98] sm:$0xff]   ;;  %v4797_v62 = vld [vmem:[%s6337_s7 + $0x68] sm:$0xff]  }
 0x380   :  { %v2434_v2 = vpack.c.bf16 %v4885_v0, %v4877_v58  ;;  %v2437_v50 = vmul.bf16 %v2433_v63, %v5691_v12  ;;  %v4788_v12 = vld [vmem:[%s6337_s7 + $0x50] sm:$0xff]   ;;  %v4792_v58 = vld [vmem:[%s6337_s7 + $0x18] sm:$0xff]   ;;  %v4795_v61 = vld [vmem:[%s6337_s7 + $0x20] sm:$0xff]  }
 0x381   :  { %v2436_v3 = vmul.bf16 %v2432_v1, %v5693_v13  ;;  %v4738_v13 = vld [vmem:[%s6336_s5 + $0x22c] ss:$16 sps:$4 sm:$0xff]   ;;  %v4799_v1 = vld [vmem:[%s6337_s7 + $0xb0] sm:$0xff]  }
 0x382   :  { %v2438_v8 = vmul.bf16 %v2434_v2, %v5695_v14  ;;  %v4744_v14 = vld [vmem:[%s6336_s5 + $0x24c] ss:$16 sps:$4 sm:$0xff]   ;;  %v4800_v2 = vld [vmem:[%s6337_s7 + $0x70] sm:$0xff]  }
 0x383   :  { %2995 = vmatprep.mubr.bf16.mxu0 %v2436_v3  ;;  %3081 = vmatprep.mubr.bf16.mxu1 %v2436_v3  ;;  %v4796_v63 = vld [vmem:[%s6337_s7 + $0xa8] sm:$0xff]   ;;  %v4801_v3 = vld [vmem:[%s6337_s7 + $0x30] sm:$0xff]  }
 0x384   :  { %2996 = vmatmul.mubr.bf16.vlgmr.msra.gmra.mrb[12].mxu0 %v2435_v6  ;;  %3082 = vmatmul.mubr.bf16.vlgmr.msra.gmra.mrb[12].mxu1 %v2435_v6  ;;  %v4798_v0 = vld [vmem:[%s6337_s7 + $0x28] sm:$0xff]   ;;  %v4804_v6 = vld [vmem:[%s6337_s7 + $0x38] sm:$0xff]  }
 0x385   :  { %3007 = vmatpush1.bf16.msra.mxu0 %v4727_v4  ;;  %3093 = vmatpush1.bf16.msra.mxu1 %v4730_v5  ;;  %v4802_v4 = vld [vmem:[%s6337_s7 + $0xb8] sm:$0xff]  }
 0x386   :  { %4089 = vmatprep.mubr.msk.bf16.mxu0 %vm1539_vm0, %v2438_v8  ;;  %4090 = vmatprep.mubr.msk.bf16.mxu1 %vm1539_vm0, %v2438_v8  ;;  %v4803_v5 = vld [vmem:[%s6337_s7 + $0x78] sm:$0xff]  }
 0x387   :  { %3008 = vmatprep.subr.bf16.mxu0 %v4735_v7  ;;  %3094 = vmatprep.subr.bf16.mxu1 %v4738_v13  ;;  %v4805_v7 = vld [vmem:[%s6337_s7 + $0xc0] sm:$0xff]   ;;  %v4811_v8 = vld [vmem:[%s6338_s8 + $0xc] ss:$16 sps:$4 sm:$0xff]  }
 0x388   :  { %v4808_v13 = vld [vmem:[%s6338_s8 + $0x4] ss:$16 sps:$4 sm:$0xff]  }
 0x389   :  { %3009 = vmatpush1.bf16.msra.mxu0 %v4733_v10  ;;  %3095 = vmatpush1.bf16.msra.mxu1 %v4736_v9  ;;  %v412_v10 = vld [vmem:[%s6339_s6] sm:$0xf] }
 0x38a   :  { %3010 = vmatprep.subr.bf16.mxu0 %v4741_v15  ;;  %3096 = vmatprep.subr.bf16.mxu1 %v4744_v14  ;;  %v2443_v9 = vrot.slane %v412_v10, %v506_v41  ;;  %v2451_v15 = vrot.slane %v412_v10, %v514_v42  ;;  %v2447_v14 = vrot.slane %v412_v10, %v510_v44 }
 0x38d   :  { %3011 = vmatpush1.bf16.msra.mxu0 %v4739_v16  ;;  %3097 = vmatpush1.bf16.msra.mxu1 %v4742_v17  ;;  %v2455_v16 = vrot.slane %v412_v10, %v518_v45 }
 0x38e   :  { %3012 = vmatprep.subr.bf16.mxu0 %v4747_v18  ;;  %3098 = vmatprep.subr.bf16.mxu1 %v4750_v19 }
 0x391   :  { %3013 = vmatpush1.bf16.msra.mxu0 %v4745_v20  ;;  %3099 = vmatpush1.bf16.msra.mxu1 %v4748_v21 }
 0x392   :  { %3014 = vmatprep.subr.bf16.mxu0 %v4753_v22  ;;  %3100 = vmatprep.subr.bf16.mxu1 %v4756_v23 }
 0x395   :  { %3015 = vmatpush1.bf16.msra.mxu0 %v4751_v24  ;;  %3101 = vmatpush1.bf16.msra.mxu1 %v4754_v25 }
 0x396   :  { %3016 = vmatprep.subr.bf16.mxu0 %v4759_v26  ;;  %3102 = vmatprep.subr.bf16.mxu1 %v4762_v27 }
 0x399   :  { %3017 = vmatpush1.bf16.msra.mxu0 %v4757_v28  ;;  %3103 = vmatpush1.bf16.msra.mxu1 %v4760_v29 }
 0x39a   :  { %3018 = vmatprep.subr.bf16.mxu0 %v4765_v30  ;;  %3104 = vmatprep.subr.bf16.mxu1 %v4768_v31 }
 0x39d   :  { %3019 = vmatpush1.bf16.msra.mxu0 %v4763_v32  ;;  %3105 = vmatpush1.bf16.msra.mxu1 %v4766_v33 }
 0x39e   :  { %3020 = vmatprep.subr.bf16.mxu0 %v4771_v34  ;;  %3106 = vmatprep.subr.bf16.mxu1 %v4774_v35 }
 0x3a1   :  { %3021 = vmatpush1.bf16.msra.mxu0 %v4769_v36  ;;  %3107 = vmatpush1.bf16.msra.mxu1 %v4772_v37 }
 0x3a2   :  { %3022 = vmatprep.subr.bf16.mxu0 %v4777_v38  ;;  %3108 = vmatprep.subr.bf16.mxu1 %v4780_v39 }
 0x3a5   :  { %3023 = vmatpush1.bf16.msra.mxu0 %v4775_v43  ;;  %3109 = vmatpush1.bf16.msra.mxu1 %v4778_v46  ;;  %v4806_v43 = vld [vmem:[%s6338_s8] ss:$16 sps:$4 sm:$0xff]   ;;  %v4809_v46 = vld [vmem:[%s6338_s8 + $0x8] ss:$16 sps:$4 sm:$0xff]  }
 0x3a6   :  { %3341 = vmatprep.subr.bf16.mxu1 %v4918_v11  ;;  %4183 = vmatprep.subr.bf16.mxu0 %v4782_v47  ;;  %v4814_v47 = vld [vmem:[%s6338_s8 + $0x24] ss:$16 sps:$4 sm:$0xff]  }
 0x3a8   :  { %3039 = vmatmul.mubr.bf16.vlgmr.msra.gmra.mrb[12].mxu0 %v2437_v50  ;;  %3125 = vmatmul.mubr.bf16.vlgmr.msra.gmra.mrb[12].mxu1 %v2437_v50  ;;  %v4815_v50 = vld [vmem:[%s6338_s8 + $0x28] ss:$16 sps:$4 sm:$0xff]  }
 0x3a9   :  { %3342 = vmatpush1.bf16.msra.mxu1 %v4781_v48  ;;  %4184 = vmatpush3.bf16.msra.mxu0 %v4783_v49  ;;  %v4817_v48 = vld [vmem:[%s6338_s8 + $0x2c] ss:$16 sps:$4 sm:$0xff]   ;;  %v4812_v49 = vld [vmem:[%s6338_s8 + $0x20] ss:$16 sps:$4 sm:$0xff]  }
 0x3aa   :  { %3343 = vmatprep.subr.bf16.mxu1 %v4918_v11  ;;  %4185 = vmatprep.subr.bf16.mxu0 %v4785_v51  ;;  %v4820_v51 = vld [vmem:[%s6338_s8 + $0x44] ss:$16 sps:$4 sm:$0xff]  }
 0x3ad   :  { %3344 = vmatpush1.bf16.msra.mxu1 %v4784_v52  ;;  %4186 = vmatpush3.bf16.msra.mxu0 %v4786_v53  ;;  %v4823_v52 = vld [vmem:[%s6338_s8 + $0x4c] ss:$16 sps:$4 sm:$0xff]   ;;  %v4818_v53 = vld [vmem:[%s6338_s8 + $0x40] ss:$16 sps:$4 sm:$0xff]  }
 0x3ae   :  { %3345 = vmatprep.subr.bf16.mxu1 %v4918_v11  ;;  %4187 = vmatprep.subr.bf16.mxu0 %v4788_v12  ;;  %v4821_v12 = vld [vmem:[%s6338_s8 + $0x48] ss:$16 sps:$4 sm:$0xff]  }
 0x3b1   :  { %3346 = vmatpush1.bf16.msra.mxu1 %v4787_v54  ;;  %4188 = vmatpush3.bf16.msra.mxu0 %v4789_v55  ;;  %v4826_v54 = vld [vmem:[%s6338_s8 + $0x64] ss:$16 sps:$4 sm:$0xff]   ;;  %v4824_v55 = vld [vmem:[%s6338_s8 + $0x60] ss:$16 sps:$4 sm:$0xff]  }
 0x3b2   :  { %3347 = vmatprep.subr.bf16.mxu1 %v4918_v11  ;;  %4189 = vmatprep.subr.bf16.mxu0 %v4791_v56  ;;  %v4827_v56 = vld [vmem:[%s6338_s8 + $0x68] ss:$16 sps:$4 sm:$0xff]  }
 0x3b5   :  { %3348 = vmatpush1.bf16.msra.mxu1 %v4790_v57  ;;  %4190 = vmatpush3.bf16.msra.mxu0 %v4792_v58  ;;  %v4832_v57 = vld [vmem:[%s6338_s8 + $0x84] ss:$16 sps:$4 sm:$0xff]   ;;  %v4835_v58 = vld [vmem:[%s6338_s8 + $0x8c] ss:$16 sps:$4 sm:$0xff]  }
 0x3b6   :  { %3349 = vmatprep.subr.bf16.mxu1 %v4918_v11  ;;  %4191 = vmatprep.subr.bf16.mxu0 %v4794_v59  ;;  %v4830_v59 = vld [vmem:[%s6338_s8 + $0x80] ss:$16 sps:$4 sm:$0xff]  }
 0x3b9   :  { %3350 = vmatpush1.bf16.msra.mxu1 %v4793_v60  ;;  %4192 = vmatpush3.bf16.msra.mxu0 %v4795_v61  ;;  %v4833_v60 = vld [vmem:[%s6338_s8 + $0x88] ss:$16 sps:$4 sm:$0xff]   ;;  %v4838_v61 = vld [vmem:[%s6338_s8 + $0xa4] ss:$16 sps:$4 sm:$0xff]  }
 0x3ba   :  { %3351 = vmatprep.subr.bf16.mxu1 %v4918_v11  ;;  %4193 = vmatprep.subr.bf16.mxu0 %v4797_v62  ;;  %v4841_v62 = vld [vmem:[%s6338_s8 + $0xac] ss:$16 sps:$4 sm:$0xff]  }
 0x3bd   :  { %3352 = vmatpush1.bf16.msra.mxu1 %v4796_v63  ;;  %4194 = vmatpush3.bf16.msra.mxu0 %v4798_v0  ;;  %v4836_v63 = vld [vmem:[%s6338_s8 + $0xa0] ss:$16 sps:$4 sm:$0xff]   ;;  %v4839_v0 = vld [vmem:[%s6338_s8 + $0xa8] ss:$16 sps:$4 sm:$0xff]  }
 0x3be   :  { %3353 = vmatprep.subr.bf16.mxu1 %v4918_v11  ;;  %4195 = vmatprep.subr.bf16.mxu0 %v4800_v2  ;;  %v4847_v2 = vld [vmem:[%s6338_s8 + $0xcc] ss:$16 sps:$4 sm:$0xff]  }
 0x3c1   :  { %3354 = vmatpush1.bf16.msra.mxu1 %v4799_v1  ;;  %4196 = vmatpush3.bf16.msra.mxu0 %v4801_v3  ;;  %v4844_v1 = vld [vmem:[%s6338_s8 + $0xc4] ss:$16 sps:$4 sm:$0xff]   ;;  %v4842_v3 = vld [vmem:[%s6338_s8 + $0xc0] ss:$16 sps:$4 sm:$0xff]  }
 0x3c2   :  { %3355 = vmatprep.subr.bf16.mxu1 %v4918_v11  ;;  %4197 = vmatprep.subr.bf16.mxu0 %v4803_v5  ;;  %v4850_v5 = vld [vmem:[%s6338_s8 + $0xe4] ss:$16 sps:$4 sm:$0xff]  }
 0x3c5   :  { %3356 = vmatpush1.bf16.msra.mxu1 %v4802_v4  ;;  %4198 = vmatpush3.bf16.msra.mxu0 %v4804_v6  ;;  %v4845_v4 = vld [vmem:[%s6338_s8 + $0xc8] ss:$16 sps:$4 sm:$0xff]   ;;  %v4853_v6 = vld [vmem:[%s6338_s8 + $0xec] ss:$16 sps:$4 sm:$0xff]  }
 0x3c6   :  { %3357 = vmatprep.subr.bf16.mxu1 %v4918_v11  ;;  %3545 = vmatprep.subr.bf16.mxu0 %v4808_v13  ;;  %v4851_v13 = vld [vmem:[%s6338_s8 + $0xe8] ss:$16 sps:$4 sm:$0xff]  }
 0x3c9   :  { %3358 = vmatpush1.bf16.msra.mxu1 %v4805_v7  ;;  %v4848_v7 = vld [vmem:[%s6338_s8 + $0xe0] ss:$16 sps:$4 sm:$0xff]  }
 0x3ca   :  { %3588 = vmatprep.subr.bf16.mxu1 %v4811_v8 }
 0x47b   :  { %v3040_v17 = vpop.f32.mrb[12].mxu0  ;;  %v3126_v18 = vpop.f32.mrb[12].mxu1 }
 0x47c   :  { %v4213_v19 = vadd.f32 %v3040_v17, %v2443_v9  ;;  %v4217_v20 = vadd.f32 %v3126_v18, %v2451_v15  ;;  %v3042_v21 = vpop.f32.mrb[13].mxu0  ;;  %v3128_v22 = vpop.f32.mrb[13].mxu1 }
 0x47d   :  { %v4214_v23 = vadd.f32 %v3042_v21, %v2447_v14  ;;  %v4218_v24 = vadd.f32 %v3128_v22, %v2455_v16  ;;  %v3044_v25 = vpop.f32.mrb[14].mxu0  ;;  %v3130_v26 = vpop.f32.mrb[14].mxu1 }
 0x47e   :  { %v4215_v41 = vadd.f32 %v3044_v25, %v2443_v9  ;;  %v4219_v27 = vadd.f32 %v3130_v26, %v2451_v15  ;;  %v3046_v28 = vpop.f32.mrb[15].mxu0  ;;  %v3132_v42 = vpop.f32.mrb[15].mxu1  ;;  %v3135_v44 = vmax.f32 %v4213_v19, 0.0  ;;  %v3137_v31 = vmax.f32 %v4217_v20, 0.0 }
 0x47f   :  { %v4216_v29 = vadd.f32 %v3046_v28, %v2447_v14  ;;  %v4220_v30 = vadd.f32 %v3132_v42, %v2455_v16  ;;  %v3136_v32 = vmax.f32 %v4214_v23, 0.0  ;;  %v3138_v33 = vmax.f32 %v4218_v24, 0.0 }
 0x480   :  { %v3139_v40 = vmax.f32 %v4215_v41, 0.0  ;;  %v3141_v45 = vmax.f32 %v4219_v27, 0.0 }
 0x481   :  { %v3140_v34 = vmax.f32 %v4216_v29, 0.0  ;;  %v3142_v35 = vmax.f32 %v4220_v30, 0.0 }
 0x482   :  { %v6210_v36 = vpack.c.bf16 %v3139_v40, %v3135_v44  ;;  %v6212_v37 = vpack.c.bf16 %v3141_v45, %v3137_v31 }
 0x483   :  { %v6214_v38 = vpack.c.bf16 %v3140_v34, %v3136_v32  ;;  %v6216_v39 = vpack.c.bf16 %v3142_v35, %v3138_v33 }
 0x485   :  { %3332 = vmatprep.mubr.bf16.mxu0 %v6214_v38  ;;  %4116 = vmatprep.mubr.msk.bf16.mxu1 %vm1539_vm0, %v6216_v39 }
 0x486   :  { %3333 = vmatmul.mubr.bf16.vlgmr.msra.gmra.mrb[16].mxu0 %v6210_v36  ;;  %3374 = vmatmul.mubr.bf16.vlgmr.msra.gmra.mrb[16].mxu1 %v6212_v37 }
 0x487   :  { %3546 = vmatpush1.bf16.msra.mxu0 %v4806_v43  ;;  %3589 = vmatpush1.bf16.msra.mxu1 %v4809_v46 }
 0x488   :  { %3547 = vmatprep.subr.bf16.mxu0 %v4814_v47  ;;  %3590 = vmatprep.subr.bf16.mxu1 %v4817_v48 }
 0x489   :  { %3577 = vmatprep.mubr.bf16.mxu0 %v4918_v11  ;;  %3620 = vmatprep.mubr.bf16.mxu1 %v4918_v11  ;;  %v4829_v11 = vld [vmem:[%s6338_s8 + $0x6c] ss:$16 sps:$4 sm:$0xff]  }
 0x48b   :  { %3548 = vmatpush1.bf16.msra.mxu0 %v4812_v49  ;;  %3591 = vmatpush1.bf16.msra.mxu1 %v4815_v50 }
 0x48c   :  { %3549 = vmatprep.subr.bf16.mxu0 %v4820_v51  ;;  %3592 = vmatprep.subr.bf16.mxu1 %v4823_v52 }
 0x48f   :  { %3550 = vmatpush1.bf16.msra.mxu0 %v4818_v53  ;;  %3593 = vmatpush1.bf16.msra.mxu1 %v4821_v12 }
 0x490   :  { %3551 = vmatprep.subr.bf16.mxu0 %v4826_v54  ;;  %3594 = vmatprep.subr.bf16.mxu1 %v4829_v11 }
 0x493   :  { %3552 = vmatpush1.bf16.msra.mxu0 %v4824_v55  ;;  %3595 = vmatpush1.bf16.msra.mxu1 %v4827_v56 }
 0x494   :  { %3553 = vmatprep.subr.bf16.mxu0 %v4832_v57  ;;  %3596 = vmatprep.subr.bf16.mxu1 %v4835_v58 }
 0x497   :  { %3554 = vmatpush1.bf16.msra.mxu0 %v4830_v59  ;;  %3597 = vmatpush1.bf16.msra.mxu1 %v4833_v60 }
 0x498   :  { %3555 = vmatprep.subr.bf16.mxu0 %v4838_v61  ;;  %3598 = vmatprep.subr.bf16.mxu1 %v4841_v62 }
 0x49b   :  { %3556 = vmatpush1.bf16.msra.mxu0 %v4836_v63  ;;  %3599 = vmatpush1.bf16.msra.mxu1 %v4839_v0 }
 0x49c   :  { %3557 = vmatprep.subr.bf16.mxu0 %v4844_v1  ;;  %3600 = vmatprep.subr.bf16.mxu1 %v4847_v2 }
 0x49f   :  { %3558 = vmatpush1.bf16.msra.mxu0 %v4842_v3  ;;  %3601 = vmatpush1.bf16.msra.mxu1 %v4845_v4 }
 0x4a0   :  { %3559 = vmatprep.subr.bf16.mxu0 %v4850_v5  ;;  %3602 = vmatprep.subr.bf16.mxu1 %v4853_v6 }
 0x4a3   :  { %3560 = vmatpush1.bf16.msra.mxu0 %v4848_v7  ;;  %3603 = vmatpush1.bf16.msra.mxu1 %v4851_v13 }
 0x559   :  { %v4199_v8 = vpop.f32.mrb[16].mxu0  ;;  %v3375_v10 = vpop.f32.mrb[16].mxu1 }
 0x55a   :  { %v4200_v9 = vpop.f32.mrb[17].mxu0  ;;  %v3377_v15 = vpop.f32.mrb[17].mxu1 }
 0x55b   :  { %v4201_v14 = vadd.f32 %v4200_v9, %v4199_v8  ;;  %v4202_v16 = vpop.f32.mrb[18].mxu0  ;;  %v3378_v17 = vpop.f32.mrb[18].mxu1 }
 0x55c   :  { %v4203_v18 = vpop.f32.mrb[19].mxu0  ;;  %v3380_v19 = vpop.f32.mrb[19].mxu1 }
 0x55d   :  { %v3376_v20 = vadd.f32 %v4201_v14, %v3375_v10  ;;  %v4204_v21 = vadd.f32 %v4203_v18, %v4202_v16 }
 0x55f   :  { %v3379_v22 = vadd.f32 %v4204_v21, %v3378_v17  ;;  %v3382_v23 = vmax.f32 %v3376_v20, 0.0 }
 0x561   :  { %v3383_v24 = vmax.f32 %v3379_v22, 0.0 }
 0x563   :  { %v3384_v25 = vpack.c.bf16 %v3383_v24, %v3382_v23 }
 0x565   :  { %3578 = vmatmul.mubr.bf16.vlgmr.msra.gmra.mrb[20].mxu0 %v3384_v25  ;;  %3621 = vmatmul.mubr.bf16.vlgmr.msra.gmra.mrb[20].mxu1 %v3384_v25 }
 0x638   :  { %v3579_v26 = vpop.f32.mrb[20].mxu0  ;;  %v3622_v41 = vpop.f32.mrb[20].mxu1 }
 0x639   :  { %v4149_v27 = vmul.f32 -1.442695, %v3579_v26  ;;  %v4151_v28 = vmul.f32 -1.442695, %v3622_v41  ;;  %v3581_v42 = vpop.f32.mrb[21].mxu0  ;;  %v3624_v29 = vpop.f32.mrb[21].mxu1 }
 0x63a   :  { %v4150_v30 = vmul.f32 -1.442695, %v3581_v42  ;;  %v4152_v44 = vmul.f32 -1.442695, %v3624_v29  ;;  %v3583_v31 = vpop.f32.mrb[22].mxu0  ;;  %v3626_v40 = vpop.f32.mrb[22].mxu1 }
 0x63b   :  { %4886 = vpow2.f32 %v4149_v27  ;;  %v4153_v45 = vmul.f32 -1.442695, %v3583_v31  ;;  %v3585_v32 = vpop.f32.mrb[23].mxu0  ;;  %v3628_v33 = vpop.f32.mrb[23].mxu1  ;;  %v4155_v34 = vmul.f32 -1.442695, %v3626_v40 }
 0x63c   :  { %4888 = vpow2.f32 %v4151_v28  ;;  %v4154_v35 = vmul.f32 -1.442695, %v3585_v32  ;;  %v4156_v43 = vmul.f32 -1.442695, %v3628_v33 }
 0x63d   :  { %4890 = vpow2.f32 %v4150_v30 }
 0x63e   :  { %4892 = vpow2.f32 %v4152_v44 }
 0x63f   :  { %4894 = vpow2.f32 %v4153_v45 }
 0x640   :  { %4896 = vpow2.f32 %v4155_v34 }
 0x641   :  { %4898 = vpow2.f32 %v4154_v35 }
 0x642   :  { %4900 = vpow2.f32 %v4156_v43 }
 0x645   :  { %v4887_v46 = vpop.eup %4886 }
 0x646   :  { %v4889_v47 = vpop.eup %4888  ;;  %v3655_v48 = vadd.f32 1.0, %v4887_v46 }
 0x647   :  { %v4891_v49 = vpop.eup %4890  ;;  %v3657_v50 = vadd.f32 1.0, %v4889_v47 }
 0x648   :  { %v4893_v51 = vpop.eup %4892  ;;  %4902 = vrcp.f32 %v3655_v48  ;;  %v3656_v52 = vadd.f32 1.0, %v4891_v49 }
 0x649   :  { %v4895_v53 = vpop.eup %4894  ;;  %4904 = vrcp.f32 %v3657_v50  ;;  %v3658_v12 = vadd.f32 1.0, %v4893_v51 }
 0x64a   :  { %v4897_v54 = vpop.eup %4896  ;;  %4906 = vrcp.f32 %v3656_v52  ;;  %v3659_v11 = vadd.f32 1.0, %v4895_v53 }
 0x64b   :  { %v4899_v55 = vpop.eup %4898  ;;  %4908 = vrcp.f32 %v3658_v12  ;;  %v3661_v56 = vadd.f32 1.0, %v4897_v54 }
 0x64c   :  { %v4901_v57 = vpop.eup %4900  ;;  %4910 = vrcp.f32 %v3659_v11  ;;  %v3660_v58 = vadd.f32 1.0, %v4899_v55 }
 0x64d   :  { %4912 = vrcp.f32 %v3661_v56  ;;  %v3662_v59 = vadd.f32 1.0, %v4901_v57 }
 0x64e   :  { %4914 = vrcp.f32 %v3660_v58 }
 0x64f   :  { %4916 = vrcp.f32 %v3662_v59 }
 0x652   :  { %v4903_v60 = vpop.eup %4902 }
 0x653   :  { %v4905_v61 = vpop.eup %4904 }
 0x654   :  { %v4907_v62 = vpop.eup %4906 }
 0x655   :  { %v4909_v63 = vpop.eup %4908 }
 0x656   :  { %v4911_v0 = vpop.eup %4910 }
 0x657   :  { %v4913_v1 = vpop.eup %4912  ;;  %v3679_v2 = vpack.c.bf16 %v4911_v0, %v4903_v60 }
 0x658   :  { %v4915_v3 = vpop.eup %4914  ;;  %v3681_v4 = vpack.c.bf16 %v4913_v1, %v4905_v61 }
 0x659   :  { %v4917_v5 = vpop.eup %4916  ;;  %v3683_v6 = vmul.bf16 %v3679_v2, %v6210_v36  ;;  %v3680_v7 = vpack.c.bf16 %v4915_v3, %v4907_v62 }
 0x65a   :  { %v3685_v13 = vmul.bf16 %v3681_v4, %v6212_v37  ;;  %v3682_v8 = vpack.c.bf16 %v4917_v5, %v4909_v63 }
 0x65b   :  { %v3684_v10 = vmul.bf16 %v3680_v7, %v6214_v38 }
 0x65c   :  { %v3686_v9 = vmul.bf16 %v3682_v8, %v6216_v39 }
 0x65d   :  { %v4157_v15 = vcombine.low %v3683_v6, %v3684_v10  ;;  %v4159_v14 = vcombine.high %v3683_v6, %v3684_v10 }
 0x65e   :  { %v4158_v16 = vcombine.low %v3685_v13, %v3686_v9  ;;  %v4160_v17 = vcombine.high %v3685_v13, %v3686_v9 }
 0x65f   :  { %3707 = vst [vmem:[%s6340_s9] sm:$0xff] %v4157_v15  ;;  %3712 = vst [vmem:[%s6340_s9 + $0x10] sm:$0xff] %v4159_v14 }
 0x660   :  { %3711 = vst.msk [vmem:[%s6340_s9 + $0x8] sm:$0xff] %vm3710_vm3, %v4158_v16  ;;  %3713 = vst.msk [vmem:[%s6340_s9 + $0x18] sm:$0xff] %vm3710_vm3, %v4160_v17 }

</bundles_post_ra>
